<compile_context>
chip_gen: v7x
topology: tpu7x:2x2x1
jax: 0.10.0
libtpu: 0.0.40
codegen_flags: <defaults>
</compile_context>

<pallas_src>
import functools

import jax
import jax.numpy as jnp
from jax.experimental import pallas as pl
from jax.experimental.pallas import tpu as pltpu  # noqa: F401  (TPU backend)


# ----------------------------------------------------------------------------
# Fused Pallas kernel: whole model forward (both streams packed along lanes)
# ----------------------------------------------------------------------------

def _fused_model_kernel(*refs, T, Bp, H, n_layers):
    """Ref order (all full VMEM blocks):

      x_cat  : (T*Bp, I_a+I_f)   time-major, batch padded to Bp (mult. of 8)
      wih0   : (I_a+I_f, 8H)     block-diag layer-0 input weights, both streams
      whh0   : (2H, 8H)          block-diag layer-0 recurrent weights
      b0     : (1, 8H)
      for each layer l >= 1:
        w_l  : (4H, 8H)          rows = [in_a | in_f | h_a | h_f] fused W_ih;W_hh
        b_l  : (1, 8H)
      w_eff  : (2H, n_output)    folded fc + combine weights
      b_eff  : (1, n_output)
      out    : (Bp, n_output)

    Packed gate column layout along 8H lanes: [i_a i_f f_a f_f o_a o_f g_a g_f].
    Packed state layout along 2H lanes:       [*_a | *_f].
    """
    x_ref = refs[0]
    wih0 = refs[1][...]
    whh0 = refs[2][...]
    b0 = refs[3][...]
    off = 4
    upper = []
    for _ in range(1, n_layers):
        upper.append((refs[off][...], refs[off + 1][...]))
        off += 2
    w_eff = refs[off][...]
    b_eff = refs[off + 1][...]
    out_ref = refs[-1]

    H2 = 2 * H
    H6 = 6 * H

    def cell(gates, c):
        # sigmoid(x) = 0.5*tanh(0.5*x)+0.5 : one wide EUP push covers i|f|o.
        ifo = 0.5 * jnp.tanh(0.5 * gates[:, :H6]) + 0.5
        g = jnp.tanh(gates[:, H6:])
        i = ifo[:, 0:H2]
        f = ifo[:, H2:2 * H2]
        o = ifo[:, 2 * H2:3 * H2]
        c_new = f * c + i * g
        h_new = o * jnp.tanh(c_new)
        return h_new, c_new

    # Hoisted layer-0 input projection for BOTH streams: one matmul.
    xg = jnp.dot(x_ref[...], wih0, preferred_element_type=jnp.float32) + b0

    hs = [jnp.zeros((Bp, H2), jnp.float32) for _ in range(n_layers)]
    cs = [jnp.zeros((Bp, H2), jnp.float32) for _ in range(n_layers)]

    for t in range(T):                       # static unroll, T is small
        # Layer 0: aligned slice of hoisted projection + one packed matmul.
        gates0 = xg[t * Bp:(t + 1) * Bp, :] + jnp.dot(
            hs[0], whh0, preferred_element_type=jnp.float32)
        hs[0], cs[0] = cell(gates0, cs[0])
        # Upper layers: fused [layer_in | h] @ [W_ih ; W_hh] packed matmul.
        for l in range(1, n_layers):
            w_l, b_l = upper[l - 1]
            inp = jnp.concatenate([hs[l - 1], hs[l]], axis=1)   # (Bp, 4H)
            gates = jnp.dot(inp, w_l, preferred_element_type=jnp.float32) + b_l
            hs[l], cs[l] = cell(gates, cs[l])
        # dropout(0.3) between layers: identity in eval mode.

    # Folded fc + drop(0.5, identity) + combine tail: single matmul.
    out = jnp.dot(hs[-1], w_eff, preferred_element_type=jnp.float32) + b_eff
    out_ref[...] = out.astype(out_ref.dtype)


def _full_spec(shape):
    zeros = (0,) * len(shape)
    return pl.BlockSpec(shape, lambda *_args, _z=zeros: _z)


# ----------------------------------------------------------------------------
# Weight packing (host-side param prep)
# ----------------------------------------------------------------------------

def _place_gates(w_t, H, stream):
    """w_t: (..., 4H) in PyTorch gate order (i, f, g, o).

    Returns (..., 8H) in the packed layout [i_a i_f f_a f_f o_a o_f g_a g_f]
    with only `stream`'s (0=audio, 1=facial) slots non-zero."""
    i_w, f_w, g_w, o_w = [w_t[..., k * H:(k + 1) * H] for k in range(4)]
    z = jnp.zeros_like(i_w)
    slots = [z] * 8
    slots[0 + stream] = i_w
    slots[2 + stream] = f_w
    slots[4 + stream] = o_w
    slots[6 + stream] = g_w
    return jnp.concatenate(slots, axis=-1)


def pack_params(params):
    H = params["hidden_dim"]
    n_layers = params["n_layers"]
    n_output = params["n_output"]
    raw_a = params["lstm_a"]["raw"]
    raw_f = params["lstm_f"]["raw"]

    packed = {}

    # Layer 0: block-diag input + recurrent weights across streams.
    wih_a0, whh_a0, bih_a0, bhh_a0 = raw_a[0]
    wih_f0, whh_f0, bih_f0, bhh_f0 = raw_f[0]
    packed["wih0"] = jnp.concatenate(
        [_place_gates(wih_a0.T, H, 0), _place_gates(wih_f0.T, H, 1)], axis=0)
    packed["whh0"] = jnp.concatenate(
        [_place_gates(whh_a0.T, H, 0), _place_gates(whh_f0.T, H, 1)], axis=0)
    packed["b0"] = (_place_gates((bih_a0 + bhh_a0)[None, :], H, 0)
                    + _place_gates((bih_f0 + bhh_f0)[None, :], H, 1))

    # Upper layers: fuse W_ih / W_hh along the contraction dim, both streams.
    ups = []
    for l in range(1, n_layers):
        wih_a, whh_a, bih_a, bhh_a = raw_a[l]
        wih_f, whh_f, bih_f, bhh_f = raw_f[l]
        w_l = jnp.concatenate(
            [_place_gates(wih_a.T, H, 0), _place_gates(wih_f.T, H, 1),
             _place_gates(whh_a.T, H, 0), _place_gates(whh_f.T, H, 1)], axis=0)
        b_l = (_place_gates((bih_a + bhh_a)[None, :], H, 0)
               + _place_gates((bih_f + bhh_f)[None, :], H, 1))
        ups.append((w_l, b_l))
    packed["upper"] = ups

    # Fold fc + combine into effective weights (exact: dropout is identity).
    fc_w, fc_b = params["fc"]["raw"]          # (n_out, H), (n_out,)
    cw, cb = params["combine"]["raw"]         # (n_out, 2*n_out), (n_out,)
    fc_w_t = fc_w.T                           # (H, n_out)
    w_a = cw.T[:n_output]                     # (n_out, n_out)
    w_f = cw.T[n_output:]
    packed["w_eff"] = jnp.concatenate([fc_w_t @ w_a, fc_w_t @ w_f], axis=0)
    packed["b_eff"] = fc_b[None, :] @ (w_a + w_f) + cb[None, :]
    return packed


# ----------------------------------------------------------------------------
# Wrapper
# ----------------------------------------------------------------------------

def model_forward(x_a, x_f, params):
    """x_a: (B, T, n_audio), x_f: (B, T, n_facial) -> (B, n_output)."""
    B, T, _ = x_a.shape
    H = params["hidden_dim"]
    n_layers = params["n_layers"]
    n_output = params["n_output"]
    packed = pack_params(params)

    Bp = max(8, ((B + 7) // 8) * 8)   # pad batch to the f32 sublane tile

    def pad_tm(x):
        x_tm = jnp.transpose(x, (1, 0, 2))                  # (T, B, I)
        return jnp.pad(x_tm, ((0, 0), (0, Bp - B), (0, 0)))  # (T, Bp, I)

    x_cat = jnp.concatenate([pad_tm(x_a), pad_tm(x_f)], axis=-1)
    x_cat = x_cat.reshape(T * Bp, -1)          # rows t*Bp:(t+1)*Bp = step t

    inputs = [x_cat, packed["wih0"], packed["whh0"], packed["b0"]]
    for (w_l, b_l) in packed["upper"]:
        inputs += [w_l, b_l]
    inputs += [packed["w_eff"], packed["b_eff"]]

    kernel = functools.partial(_fused_model_kernel, T=T, Bp=Bp, H=H,
                               n_layers=n_layers)

    # Advisory cost hint so XLA schedules neighbouring ops sensibly.
    i_cat = x_cat.shape[1]
    flops = 2 * (T * Bp * i_cat * 8 * H                       # hoisted proj
                 + T * Bp * 2 * H * 8 * H                     # layer-0 recur
                 + T * (n_layers - 1) * Bp * 4 * H * 8 * H    # upper layers
                 + Bp * 2 * H * n_output)                     # folded tail
    transc = T * n_layers * Bp * 10 * H
    bytes_acc = sum(int(x.size) * 4 for x in inputs) + Bp * n_output * 4

    out = pl.pallas_call(
        kernel,
        out_shape=jax.ShapeDtypeStruct((Bp, n_output), jnp.float32),
        in_specs=[_full_spec(x.shape) for x in inputs],
        out_specs=_full_spec((Bp, n_output)),
        cost_estimate=pl.CostEstimate(
            flops=flops, transcendentals=transc, bytes_accessed=bytes_acc),
    )(*inputs)
    return out[:B]


# ----------------------------------------------------------------------------
# Parameter construction (deterministic, PyTorch-style uniform init)
# ----------------------------------------------------------------------------

def _uniform(key, shape, bound):
    return jax.random.uniform(key, shape, jnp.float32, -bound, bound)


def init_lstm_params(key, input_size, hidden_dim, n_layers):
    bound = 1.0 / (hidden_dim ** 0.5)
    raw = []
    for layer in range(n_layers):
        in_sz = input_size if layer == 0 else hidden_dim
        key, k1, k2, k3, k4 = jax.random.split(key, 5)
        w_ih = _uniform(k1, (4 * hidden_dim, in_sz), bound)     # PyTorch layout
        w_hh = _uniform(k2, (4 * hidden_dim, hidden_dim), bound)
        b_ih = _uniform(k3, (4 * hidden_dim,), bound)
        b_hh = _uniform(k4, (4 * hidden_dim,), bound)
        raw.append((w_ih, w_hh, b_ih, b_hh))
    return dict(raw=raw), key


def init_linear_params(key, in_features, out_features):
    bound = 1.0 / (in_features ** 0.5)
    key, k1, k2 = jax.random.split(key, 3)
    w = _uniform(k1, (out_features, in_features), bound)        # PyTorch layout
    b = _uniform(k2, (out_features,), bound)
    return dict(raw=(w, b)), key


# ----------------------------------------------------------------------------
# Pure-JAX reference (mirrors torch.nn.LSTM / nn.Linear eval-mode forward)
# ----------------------------------------------------------------------------

def lstm_stack_ref(x_bt, layer_raws):
    h_seq = x_bt
    for (w_ih, w_hh, b_ih, b_hh) in layer_raws:
        B = h_seq.shape[0]
        H = w_hh.shape[1]

        def step(carry, xt, w_ih=w_ih, w_hh=w_hh, b_ih=b_ih, b_hh=b_hh):
            h, c = carry
            gates = xt @ w_ih.T + b_ih + h @ w_hh.T + b_hh
            i, f, g, o = jnp.split(gates, 4, axis=-1)
            i, f, o = jax.nn.sigmoid(i), jax.nn.sigmoid(f), jax.nn.sigmoid(o)
            g = jnp.tanh(g)
            c = f * c + i * g
            h = o * jnp.tanh(c)
            return (h, c), h

        h0 = jnp.zeros((B, H), jnp.float32)
        c0 = jnp.zeros((B, H), jnp.float32)
        _, ys = jax.lax.scan(step, (h0, c0), jnp.transpose(h_seq, (1, 0, 2)))
        h_seq = jnp.transpose(ys, (1, 0, 2))
    return h_seq


def model_ref(x_a, x_f, params):
    out_a_seq = lstm_stack_ref(x_a, params["lstm_a"]["raw"])
    out_f_seq = lstm_stack_ref(x_f, params["lstm_f"]["raw"])
    fc_w, fc_b = params["fc"]["raw"]
    out_a = out_a_seq[:, -1, :] @ fc_w.T + fc_b
    out_f = out_f_seq[:, -1, :] @ fc_w.T + fc_b
    out_c = jnp.concatenate([out_a, out_f], axis=1)
    cw, cb = params["combine"]["raw"]
    return out_c @ cw.T + cb


# ----------------------------------------------------------------------------
# Main
# ----------------------------------------------------------------------------

if __name__ == "__main__":
    batch = 2
    n_sequence = 8
    n_audio = 16
    n_facial = 24
    hidden_dim = 32
    n_layers = 2
    n_output = 8

    key = jax.random.PRNGKey(0)
    lstm_a_params, key = init_lstm_params(key, n_audio, hidden_dim, n_layers)
    lstm_f_params, key = init_lstm_params(key, n_facial, hidden_dim, n_layers)
    fc_params, key = init_linear_params(key, hidden_dim, n_output)
    comb_params, key = init_linear_params(key, 2 * n_output, n_output)

    params = dict(lstm_a=lstm_a_params, lstm_f=lstm_f_params,
                  fc=fc_params, combine=comb_params,
                  hidden_dim=hidden_dim, n_layers=n_layers, n_output=n_output)

    key, ka, kf = jax.random.split(key, 3)
    x_a = jax.random.normal(ka, (batch, n_sequence, n_audio), jnp.float32)
    x_f = jax.random.normal(kf, (batch, n_sequence, n_facial), jnp.float32)

    out = jax.block_until_ready(model_forward(x_a, x_f, params))
    ref = jax.block_until_ready(model_ref(x_a, x_f, params))

    assert out.shape == (batch, n_output), out.shape
    assert jnp.allclose(out, ref, rtol=1e-4, atol=1e-4), (
        f"max abs diff {jnp.max(jnp.abs(out - ref))}")

    print("KERNEL_OK")
</pallas_src>

<mosaic_0001>
module attributes {stable_mosaic.version = 11 : i64} {
  func.func @_fused_model_kernel(%arg0: memref<64x40xf32, #tpu.memory_space<vmem>>, %arg1: memref<40x256xf32, #tpu.memory_space<vmem>>, %arg2: memref<64x256xf32, #tpu.memory_space<vmem>>, %arg3: memref<1x256xf32, #tpu.memory_space<vmem>>, %arg4: memref<128x256xf32, #tpu.memory_space<vmem>>, %arg5: memref<1x256xf32, #tpu.memory_space<vmem>>, %arg6: memref<64x8xf32, #tpu.memory_space<vmem>>, %arg7: memref<1x8xf32, #tpu.memory_space<vmem>>, %arg8: memref<8x8xf32, #tpu.memory_space<vmem>>) attributes {dimension_semantics = [], scalar_prefetch = 0 : i64, scratch_operands = 0 : i64, tpu.core_type = #tpu.core_type<tc>} {
    %c0 = arith.constant 0 : index
    %c0_0 = arith.constant 0 : index
    %0 = vector.load %arg1[%c0, %c0_0] : memref<40x256xf32, #tpu.memory_space<vmem>>, vector<40x256xf32>
    %c0_1 = arith.constant 0 : index
    %c0_2 = arith.constant 0 : index
    %1 = vector.load %arg2[%c0_1, %c0_2] : memref<64x256xf32, #tpu.memory_space<vmem>>, vector<64x256xf32>
    %c0_3 = arith.constant 0 : index
    %c0_4 = arith.constant 0 : index
    %2 = vector.load %arg3[%c0_3, %c0_4] : memref<1x256xf32, #tpu.memory_space<vmem>>, vector<1x256xf32>
    %c0_5 = arith.constant 0 : index
    %c0_6 = arith.constant 0 : index
    %3 = vector.load %arg4[%c0_5, %c0_6] : memref<128x256xf32, #tpu.memory_space<vmem>>, vector<128x256xf32>
    %c0_7 = arith.constant 0 : index
    %c0_8 = arith.constant 0 : index
    %4 = vector.load %arg5[%c0_7, %c0_8] : memref<1x256xf32, #tpu.memory_space<vmem>>, vector<1x256xf32>
    %c0_9 = arith.constant 0 : index
    %c0_10 = arith.constant 0 : index
    %5 = vector.load %arg6[%c0_9, %c0_10] : memref<64x8xf32, #tpu.memory_space<vmem>>, vector<64x8xf32>
    %c0_11 = arith.constant 0 : index
    %c0_12 = arith.constant 0 : index
    %6 = vector.load %arg7[%c0_11, %c0_12] : memref<1x8xf32, #tpu.memory_space<vmem>>, vector<1x8xf32>
    %c0_13 = arith.constant 0 : index
    %c0_14 = arith.constant 0 : index
    %7 = vector.load %arg0[%c0_13, %c0_14] : memref<64x40xf32, #tpu.memory_space<vmem>>, vector<64x40xf32>
    %cst = arith.constant dense<0.000000e+00> : vector<64x256xf32>
    %8 = tpu.matmul %7, %0, %cst {dimension_numbers = #tpu.dot_dimension_numbers<[1], [0], [0], [1], [0, 0, 1, 1], [], []>} : vector<64x40xf32>, vector<40x256xf32>, vector<64x256xf32> -> vector<64x256xf32>
    %9 = vector.broadcast %2 : vector<1x256xf32> to vector<64x256xf32>
    %10 = arith.addf %8, %9 : vector<64x256xf32>
    %cst_15 = arith.constant 0.000000e+00 : f32
    %11 = vector.broadcast %cst_15 : f32 to vector<8x64xf32>
    %cst_16 = arith.constant 0.000000e+00 : f32
    %12 = vector.broadcast %cst_16 : f32 to vector<8x64xf32>
    %cst_17 = arith.constant 0.000000e+00 : f32
    %13 = vector.broadcast %cst_17 : f32 to vector<8x64xf32>
    %cst_18 = arith.constant 0.000000e+00 : f32
    %14 = vector.broadcast %cst_18 : f32 to vector<8x64xf32>
    %15 = vector.extract_strided_slice %10 {offsets = [0, 0], sizes = [8, 256], strides = [1, 1]} : vector<64x256xf32> to vector<8x256xf32>
    %cst_19 = arith.constant dense<0.000000e+00> : vector<8x256xf32>
    %16 = tpu.matmul %11, %1, %cst_19 {dimension_numbers = #tpu.dot_dimension_numbers<[1], [0], [0], [1], [0, 0, 1, 1], [], []>} : vector<8x64xf32>, vector<64x256xf32>, vector<8x256xf32> -> vector<8x256xf32>
    %17 = arith.addf %15, %16 : vector<8x256xf32>
    %18 = vector.extract_strided_slice %17 {offsets = [0, 0], sizes = [8, 192], strides = [1, 1]} : vector<8x256xf32> to vector<8x192xf32>
    %cst_20 = arith.constant 5.000000e-01 : f32
    %19 = vector.broadcast %cst_20 : f32 to vector<8x192xf32>
    %20 = arith.mulf %19, %18 : vector<8x192xf32>
    %21 = math.tanh %20 : vector<8x192xf32>
    %cst_21 = arith.constant 5.000000e-01 : f32
    %22 = vector.broadcast %cst_21 : f32 to vector<8x192xf32>
    %23 = arith.mulf %22, %21 : vector<8x192xf32>
    %cst_22 = arith.constant 5.000000e-01 : f32
    %24 = vector.broadcast %cst_22 : f32 to vector<8x192xf32>
    %25 = arith.addf %23, %24 : vector<8x192xf32>
    %26 = vector.extract_strided_slice %17 {offsets = [0, 192], sizes = [8, 64], strides = [1, 1]} : vector<8x256xf32> to vector<8x64xf32>
    %27 = math.tanh %26 : vector<8x64xf32>
    %28 = vector.extract_strided_slice %25 {offsets = [0, 0], sizes = [8, 64], strides = [1, 1]} : vector<8x192xf32> to vector<8x64xf32>
    %29 = vector.extract_strided_slice %25 {offsets = [0, 64], sizes = [8, 64], strides = [1, 1]} : vector<8x192xf32> to vector<8x64xf32>
    %30 = vector.extract_strided_slice %25 {offsets = [0, 128], sizes = [8, 64], strides = [1, 1]} : vector<8x192xf32> to vector<8x64xf32>
    %31 = arith.mulf %29, %13 : vector<8x64xf32>
    %32 = arith.mulf %28, %27 : vector<8x64xf32>
    %33 = arith.addf %31, %32 : vector<8x64xf32>
    %34 = math.tanh %33 : vector<8x64xf32>
    %35 = arith.mulf %30, %34 : vector<8x64xf32>
    %36 = tpu.concatenate %35, %12 in 1 : vector<8x64xf32>, vector<8x64xf32> -> vector<8x128xf32>
    %cst_23 = arith.constant dense<0.000000e+00> : vector<8x256xf32>
    %37 = tpu.matmul %36, %3, %cst_23 {dimension_numbers = #tpu.dot_dimension_numbers<[1], [0], [0], [1], [0, 0, 1, 1], [], []>} : vector<8x128xf32>, vector<128x256xf32>, vector<8x256xf32> -> vector<8x256xf32>
    %38 = vector.broadcast %4 : vector<1x256xf32> to vector<8x256xf32>
    %39 = arith.addf %37, %38 : vector<8x256xf32>
    %40 = vector.extract_strided_slice %39 {offsets = [0, 0], sizes = [8, 192], strides = [1, 1]} : vector<8x256xf32> to vector<8x192xf32>
    %cst_24 = arith.constant 5.000000e-01 : f32
    %41 = vector.broadcast %cst_24 : f32 to vector<8x192xf32>
    %42 = arith.mulf %41, %40 : vector<8x192xf32>
    %43 = math.tanh %42 : vector<8x192xf32>
    %cst_25 = arith.constant 5.000000e-01 : f32
    %44 = vector.broadcast %cst_25 : f32 to vector<8x192xf32>
    %45 = arith.mulf %44, %43 : vector<8x192xf32>
    %cst_26 = arith.constant 5.000000e-01 : f32
    %46 = vector.broadcast %cst_26 : f32 to vector<8x192xf32>
    %47 = arith.addf %45, %46 : vector<8x192xf32>
    %48 = vector.extract_strided_slice %39 {offsets = [0, 192], sizes = [8, 64], strides = [1, 1]} : vector<8x256xf32> to vector<8x64xf32>
    %49 = math.tanh %48 : vector<8x64xf32>
    %50 = vector.extract_strided_slice %47 {offsets = [0, 0], sizes = [8, 64], strides = [1, 1]} : vector<8x192xf32> to vector<8x64xf32>
    %51 = vector.extract_strided_slice %47 {offsets = [0, 64], sizes = [8, 64], strides = [1, 1]} : vector<8x192xf32> to vector<8x64xf32>
    %52 = vector.extract_strided_slice %47 {offsets = [0, 128], sizes = [8, 64], strides = [1, 1]} : vector<8x192xf32> to vector<8x64xf32>
    %53 = arith.mulf %51, %14 : vector<8x64xf32>
    %54 = arith.mulf %50, %49 : vector<8x64xf32>
    %55 = arith.addf %53, %54 : vector<8x64xf32>
    %56 = math.tanh %55 : vector<8x64xf32>
    %57 = arith.mulf %52, %56 : vector<8x64xf32>
    %58 = vector.extract_strided_slice %10 {offsets = [8, 0], sizes = [8, 256], strides = [1, 1]} : vector<64x256xf32> to vector<8x256xf32>
    %cst_27 = arith.constant dense<0.000000e+00> : vector<8x256xf32>
    %59 = tpu.matmul %35, %1, %cst_27 {dimension_numbers = #tpu.dot_dimension_numbers<[1], [0], [0], [1], [0, 0, 1, 1], [], []>} : vector<8x64xf32>, vector<64x256xf32>, vector<8x256xf32> -> vector<8x256xf32>
    %60 = arith.addf %58, %59 : vector<8x256xf32>
    %61 = vector.extract_strided_slice %60 {offsets = [0, 0], sizes = [8, 192], strides = [1, 1]} : vector<8x256xf32> to vector<8x192xf32>
    %cst_28 = arith.constant 5.000000e-01 : f32
    %62 = vector.broadcast %cst_28 : f32 to vector<8x192xf32>
    %63 = arith.mulf %62, %61 : vector<8x192xf32>
    %64 = math.tanh %63 : vector<8x192xf32>
    %cst_29 = arith.constant 5.000000e-01 : f32
    %65 = vector.broadcast %cst_29 : f32 to vector<8x192xf32>
    %66 = arith.mulf %65, %64 : vector<8x192xf32>
    %cst_30 = arith.constant 5.000000e-01 : f32
    %67 = vector.broadcast %cst_30 : f32 to vector<8x192xf32>
    %68 = arith.addf %66, %67 : vector<8x192xf32>
    %69 = vector.extract_strided_slice %60 {offsets = [0, 192], sizes = [8, 64], strides = [1, 1]} : vector<8x256xf32> to vector<8x64xf32>
    %70 = math.tanh %69 : vector<8x64xf32>
    %71 = vector.extract_strided_slice %68 {offsets = [0, 0], sizes = [8, 64], strides = [1, 1]} : vector<8x192xf32> to vector<8x64xf32>
    %72 = vector.extract_strided_slice %68 {offsets = [0, 64], sizes = [8, 64], strides = [1, 1]} : vector<8x192xf32> to vector<8x64xf32>
    %73 = vector.extract_strided_slice %68 {offsets = [0, 128], sizes = [8, 64], strides = [1, 1]} : vector<8x192xf32> to vector<8x64xf32>
    %74 = arith.mulf %72, %33 : vector<8x64xf32>
    %75 = arith.mulf %71, %70 : vector<8x64xf32>
    %76 = arith.addf %74, %75 : vector<8x64xf32>
    %77 = math.tanh %76 : vector<8x64xf32>
    %78 = arith.mulf %73, %77 : vector<8x64xf32>
    %79 = tpu.concatenate %78, %57 in 1 : vector<8x64xf32>, vector<8x64xf32> -> vector<8x128xf32>
    %cst_31 = arith.constant dense<0.000000e+00> : vector<8x256xf32>
    %80 = tpu.matmul %79, %3, %cst_31 {dimension_numbers = #tpu.dot_dimension_numbers<[1], [0], [0], [1], [0, 0, 1, 1], [], []>} : vector<8x128xf32>, vector<128x256xf32>, vector<8x256xf32> -> vector<8x256xf32>
    %81 = vector.broadcast %4 : vector<1x256xf32> to vector<8x256xf32>
    %82 = arith.addf %80, %81 : vector<8x256xf32>
    %83 = vector.extract_strided_slice %82 {offsets = [0, 0], sizes = [8, 192], strides = [1, 1]} : vector<8x256xf32> to vector<8x192xf32>
    %cst_32 = arith.constant 5.000000e-01 : f32
    %84 = vector.broadcast %cst_32 : f32 to vector<8x192xf32>
    %85 = arith.mulf %84, %83 : vector<8x192xf32>
    %86 = math.tanh %85 : vector<8x192xf32>
    %cst_33 = arith.constant 5.000000e-01 : f32
    %87 = vector.broadcast %cst_33 : f32 to vector<8x192xf32>
    %88 = arith.mulf %87, %86 : vector<8x192xf32>
    %cst_34 = arith.constant 5.000000e-01 : f32
    %89 = vector.broadcast %cst_34 : f32 to vector<8x192xf32>
    %90 = arith.addf %88, %89 : vector<8x192xf32>
    %91 = vector.extract_strided_slice %82 {offsets = [0, 192], sizes = [8, 64], strides = [1, 1]} : vector<8x256xf32> to vector<8x64xf32>
    %92 = math.tanh %91 : vector<8x64xf32>
    %93 = vector.extract_strided_slice %90 {offsets = [0, 0], sizes = [8, 64], strides = [1, 1]} : vector<8x192xf32> to vector<8x64xf32>
    %94 = vector.extract_strided_slice %90 {offsets = [0, 64], sizes = [8, 64], strides = [1, 1]} : vector<8x192xf32> to vector<8x64xf32>
    %95 = vector.extract_strided_slice %90 {offsets = [0, 128], sizes = [8, 64], strides = [1, 1]} : vector<8x192xf32> to vector<8x64xf32>
    %96 = arith.mulf %94, %55 : vector<8x64xf32>
    %97 = arith.mulf %93, %92 : vector<8x64xf32>
    %98 = arith.addf %96, %97 : vector<8x64xf32>
    %99 = math.tanh %98 : vector<8x64xf32>
    %100 = arith.mulf %95, %99 : vector<8x64xf32>
    %101 = vector.extract_strided_slice %10 {offsets = [16, 0], sizes = [8, 256], strides = [1, 1]} : vector<64x256xf32> to vector<8x256xf32>
    %cst_35 = arith.constant dense<0.000000e+00> : vector<8x256xf32>
    %102 = tpu.matmul %78, %1, %cst_35 {dimension_numbers = #tpu.dot_dimension_numbers<[1], [0], [0], [1], [0, 0, 1, 1], [], []>} : vector<8x64xf32>, vector<64x256xf32>, vector<8x256xf32> -> vector<8x256xf32>
    %103 = arith.addf %101, %102 : vector<8x256xf32>
    %104 = vector.extract_strided_slice %103 {offsets = [0, 0], sizes = [8, 192], strides = [1, 1]} : vector<8x256xf32> to vector<8x192xf32>
    %cst_36 = arith.constant 5.000000e-01 : f32
    %105 = vector.broadcast %cst_36 : f32 to vector<8x192xf32>
    %106 = arith.mulf %105, %104 : vector<8x192xf32>
    %107 = math.tanh %106 : vector<8x192xf32>
    %cst_37 = arith.constant 5.000000e-01 : f32
    %108 = vector.broadcast %cst_37 : f32 to vector<8x192xf32>
    %109 = arith.mulf %108, %107 : vector<8x192xf32>
    %cst_38 = arith.constant 5.000000e-01 : f32
    %110 = vector.broadcast %cst_38 : f32 to vector<8x192xf32>
    %111 = arith.addf %109, %110 : vector<8x192xf32>
    %112 = vector.extract_strided_slice %103 {offsets = [0, 192], sizes = [8, 64], strides = [1, 1]} : vector<8x256xf32> to vector<8x64xf32>
    %113 = math.tanh %112 : vector<8x64xf32>
    %114 = vector.extract_strided_slice %111 {offsets = [0, 0], sizes = [8, 64], strides = [1, 1]} : vector<8x192xf32> to vector<8x64xf32>
    %115 = vector.extract_strided_slice %111 {offsets = [0, 64], sizes = [8, 64], strides = [1, 1]} : vector<8x192xf32> to vector<8x64xf32>
    %116 = vector.extract_strided_slice %111 {offsets = [0, 128], sizes = [8, 64], strides = [1, 1]} : vector<8x192xf32> to vector<8x64xf32>
    %117 = arith.mulf %115, %76 : vector<8x64xf32>
    %118 = arith.mulf %114, %113 : vector<8x64xf32>
    %119 = arith.addf %117, %118 : vector<8x64xf32>
    %120 = math.tanh %119 : vector<8x64xf32>
    %121 = arith.mulf %116, %120 : vector<8x64xf32>
    %122 = tpu.concatenate %121, %100 in 1 : vector<8x64xf32>, vector<8x64xf32> -> vector<8x128xf32>
    %cst_39 = arith.constant dense<0.000000e+00> : vector<8x256xf32>
    %123 = tpu.matmul %122, %3, %cst_39 {dimension_numbers = #tpu.dot_dimension_numbers<[1], [0], [0], [1], [0, 0, 1, 1], [], []>} : vector<8x128xf32>, vector<128x256xf32>, vector<8x256xf32> -> vector<8x256xf32>
    %124 = vector.broadcast %4 : vector<1x256xf32> to vector<8x256xf32>
    %125 = arith.addf %123, %124 : vector<8x256xf32>
    %126 = vector.extract_strided_slice %125 {offsets = [0, 0], sizes = [8, 192], strides = [1, 1]} : vector<8x256xf32> to vector<8x192xf32>
    %cst_40 = arith.constant 5.000000e-01 : f32
    %127 = vector.broadcast %cst_40 : f32 to vector<8x192xf32>
    %128 = arith.mulf %127, %126 : vector<8x192xf32>
    %129 = math.tanh %128 : vector<8x192xf32>
    %cst_41 = arith.constant 5.000000e-01 : f32
    %130 = vector.broadcast %cst_41 : f32 to vector<8x192xf32>
    %131 = arith.mulf %130, %129 : vector<8x192xf32>
    %cst_42 = arith.constant 5.000000e-01 : f32
    %132 = vector.broadcast %cst_42 : f32 to vector<8x192xf32>
    %133 = arith.addf %131, %132 : vector<8x192xf32>
    %134 = vector.extract_strided_slice %125 {offsets = [0, 192], sizes = [8, 64], strides = [1, 1]} : vector<8x256xf32> to vector<8x64xf32>
    %135 = math.tanh %134 : vector<8x64xf32>
    %136 = vector.extract_strided_slice %133 {offsets = [0, 0], sizes = [8, 64], strides = [1, 1]} : vector<8x192xf32> to vector<8x64xf32>
    %137 = vector.extract_strided_slice %133 {offsets = [0, 64], sizes = [8, 64], strides = [1, 1]} : vector<8x192xf32> to vector<8x64xf32>
    %138 = vector.extract_strided_slice %133 {offsets = [0, 128], sizes = [8, 64], strides = [1, 1]} : vector<8x192xf32> to vector<8x64xf32>
    %139 = arith.mulf %137, %98 : vector<8x64xf32>
    %140 = arith.mulf %136, %135 : vector<8x64xf32>
    %141 = arith.addf %139, %140 : vector<8x64xf32>
    %142 = math.tanh %141 : vector<8x64xf32>
    %143 = arith.mulf %138, %142 : vector<8x64xf32>
    %144 = vector.extract_strided_slice %10 {offsets = [24, 0], sizes = [8, 256], strides = [1, 1]} : vector<64x256xf32> to vector<8x256xf32>
    %cst_43 = arith.constant dense<0.000000e+00> : vector<8x256xf32>
    %145 = tpu.matmul %121, %1, %cst_43 {dimension_numbers = #tpu.dot_dimension_numbers<[1], [0], [0], [1], [0, 0, 1, 1], [], []>} : vector<8x64xf32>, vector<64x256xf32>, vector<8x256xf32> -> vector<8x256xf32>
    %146 = arith.addf %144, %145 : vector<8x256xf32>
    %147 = vector.extract_strided_slice %146 {offsets = [0, 0], sizes = [8, 192], strides = [1, 1]} : vector<8x256xf32> to vector<8x192xf32>
    %cst_44 = arith.constant 5.000000e-01 : f32
    %148 = vector.broadcast %cst_44 : f32 to vector<8x192xf32>
    %149 = arith.mulf %148, %147 : vector<8x192xf32>
    %150 = math.tanh %149 : vector<8x192xf32>
    %cst_45 = arith.constant 5.000000e-01 : f32
    %151 = vector.broadcast %cst_45 : f32 to vector<8x192xf32>
    %152 = arith.mulf %151, %150 : vector<8x192xf32>
    %cst_46 = arith.constant 5.000000e-01 : f32
    %153 = vector.broadcast %cst_46 : f32 to vector<8x192xf32>
    %154 = arith.addf %152, %153 : vector<8x192xf32>
    %155 = vector.extract_strided_slice %146 {offsets = [0, 192], sizes = [8, 64], strides = [1, 1]} : vector<8x256xf32> to vector<8x64xf32>
    %156 = math.tanh %155 : vector<8x64xf32>
    %157 = vector.extract_strided_slice %154 {offsets = [0, 0], sizes = [8, 64], strides = [1, 1]} : vector<8x192xf32> to vector<8x64xf32>
    %158 = vector.extract_strided_slice %154 {offsets = [0, 64], sizes = [8, 64], strides = [1, 1]} : vector<8x192xf32> to vector<8x64xf32>
    %159 = vector.extract_strided_slice %154 {offsets = [0, 128], sizes = [8, 64], strides = [1, 1]} : vector<8x192xf32> to vector<8x64xf32>
    %160 = arith.mulf %158, %119 : vector<8x64xf32>
    %161 = arith.mulf %157, %156 : vector<8x64xf32>
    %162 = arith.addf %160, %161 : vector<8x64xf32>
    %163 = math.tanh %162 : vector<8x64xf32>
    %164 = arith.mulf %159, %163 : vector<8x64xf32>
    %165 = tpu.concatenate %164, %143 in 1 : vector<8x64xf32>, vector<8x64xf32> -> vector<8x128xf32>
    %cst_47 = arith.constant dense<0.000000e+00> : vector<8x256xf32>
    %166 = tpu.matmul %165, %3, %cst_47 {dimension_numbers = #tpu.dot_dimension_numbers<[1], [0], [0], [1], [0, 0, 1, 1], [], []>} : vector<8x128xf32>, vector<128x256xf32>, vector<8x256xf32> -> vector<8x256xf32>
    %167 = vector.broadcast %4 : vector<1x256xf32> to vector<8x256xf32>
    %168 = arith.addf %166, %167 : vector<8x256xf32>
    %169 = vector.extract_strided_slice %168 {offsets = [0, 0], sizes = [8, 192], strides = [1, 1]} : vector<8x256xf32> to vector<8x192xf32>
    %cst_48 = arith.constant 5.000000e-01 : f32
    %170 = vector.broadcast %cst_48 : f32 to vector<8x192xf32>
    %171 = arith.mulf %170, %169 : vector<8x192xf32>
    %172 = math.tanh %171 : vector<8x192xf32>
    %cst_49 = arith.constant 5.000000e-01 : f32
    %173 = vector.broadcast %cst_49 : f32 to vector<8x192xf32>
    %174 = arith.mulf %173, %172 : vector<8x192xf32>
    %cst_50 = arith.constant 5.000000e-01 : f32
    %175 = vector.broadcast %cst_50 : f32 to vector<8x192xf32>
    %176 = arith.addf %174, %175 : vector<8x192xf32>
    %177 = vector.extract_strided_slice %168 {offsets = [0, 192], sizes = [8, 64], strides = [1, 1]} : vector<8x256xf32> to vector<8x64xf32>
    %178 = math.tanh %177 : vector<8x64xf32>
    %179 = vector.extract_strided_slice %176 {offsets = [0, 0], sizes = [8, 64], strides = [1, 1]} : vector<8x192xf32> to vector<8x64xf32>
    %180 = vector.extract_strided_slice %176 {offsets = [0, 64], sizes = [8, 64], strides = [1, 1]} : vector<8x192xf32> to vector<8x64xf32>
    %181 = vector.extract_strided_slice %176 {offsets = [0, 128], sizes = [8, 64], strides = [1, 1]} : vector<8x192xf32> to vector<8x64xf32>
    %182 = arith.mulf %180, %141 : vector<8x64xf32>
    %183 = arith.mulf %179, %178 : vector<8x64xf32>
    %184 = arith.addf %182, %183 : vector<8x64xf32>
    %185 = math.tanh %184 : vector<8x64xf32>
    %186 = arith.mulf %181, %185 : vector<8x64xf32>
    %187 = vector.extract_strided_slice %10 {offsets = [32, 0], sizes = [8, 256], strides = [1, 1]} : vector<64x256xf32> to vector<8x256xf32>
    %cst_51 = arith.constant dense<0.000000e+00> : vector<8x256xf32>
    %188 = tpu.matmul %164, %1, %cst_51 {dimension_numbers = #tpu.dot_dimension_numbers<[1], [0], [0], [1], [0, 0, 1, 1], [], []>} : vector<8x64xf32>, vector<64x256xf32>, vector<8x256xf32> -> vector<8x256xf32>
    %189 = arith.addf %187, %188 : vector<8x256xf32>
    %190 = vector.extract_strided_slice %189 {offsets = [0, 0], sizes = [8, 192], strides = [1, 1]} : vector<8x256xf32> to vector<8x192xf32>
    %cst_52 = arith.constant 5.000000e-01 : f32
    %191 = vector.broadcast %cst_52 : f32 to vector<8x192xf32>
    %192 = arith.mulf %191, %190 : vector<8x192xf32>
    %193 = math.tanh %192 : vector<8x192xf32>
    %cst_53 = arith.constant 5.000000e-01 : f32
    %194 = vector.broadcast %cst_53 : f32 to vector<8x192xf32>
    %195 = arith.mulf %194, %193 : vector<8x192xf32>
    %cst_54 = arith.constant 5.000000e-01 : f32
    %196 = vector.broadcast %cst_54 : f32 to vector<8x192xf32>
    %197 = arith.addf %195, %196 : vector<8x192xf32>
    %198 = vector.extract_strided_slice %189 {offsets = [0, 192], sizes = [8, 64], strides = [1, 1]} : vector<8x256xf32> to vector<8x64xf32>
    %199 = math.tanh %198 : vector<8x64xf32>
    %200 = vector.extract_strided_slice %197 {offsets = [0, 0], sizes = [8, 64], strides = [1, 1]} : vector<8x192xf32> to vector<8x64xf32>
    %201 = vector.extract_strided_slice %197 {offsets = [0, 64], sizes = [8, 64], strides = [1, 1]} : vector<8x192xf32> to vector<8x64xf32>
    %202 = vector.extract_strided_slice %197 {offsets = [0, 128], sizes = [8, 64], strides = [1, 1]} : vector<8x192xf32> to vector<8x64xf32>
    %203 = arith.mulf %201, %162 : vector<8x64xf32>
    %204 = arith.mulf %200, %199 : vector<8x64xf32>
    %205 = arith.addf %203, %204 : vector<8x64xf32>
    %206 = math.tanh %205 : vector<8x64xf32>
    %207 = arith.mulf %202, %206 : vector<8x64xf32>
    %208 = tpu.concatenate %207, %186 in 1 : vector<8x64xf32>, vector<8x64xf32> -> vector<8x128xf32>
    %cst_55 = arith.constant dense<0.000000e+00> : vector<8x256xf32>
    %209 = tpu.matmul %208, %3, %cst_55 {dimension_numbers = #tpu.dot_dimension_numbers<[1], [0], [0], [1], [0, 0, 1, 1], [], []>} : vector<8x128xf32>, vector<128x256xf32>, vector<8x256xf32> -> vector<8x256xf32>
    %210 = vector.broadcast %4 : vector<1x256xf32> to vector<8x256xf32>
    %211 = arith.addf %209, %210 : vector<8x256xf32>
    %212 = vector.extract_strided_slice %211 {offsets = [0, 0], sizes = [8, 192], strides = [1, 1]} : vector<8x256xf32> to vector<8x192xf32>
    %cst_56 = arith.constant 5.000000e-01 : f32
    %213 = vector.broadcast %cst_56 : f32 to vector<8x192xf32>
    %214 = arith.mulf %213, %212 : vector<8x192xf32>
    %215 = math.tanh %214 : vector<8x192xf32>
    %cst_57 = arith.constant 5.000000e-01 : f32
    %216 = vector.broadcast %cst_57 : f32 to vector<8x192xf32>
    %217 = arith.mulf %216, %215 : vector<8x192xf32>
    %cst_58 = arith.constant 5.000000e-01 : f32
    %218 = vector.broadcast %cst_58 : f32 to vector<8x192xf32>
    %219 = arith.addf %217, %218 : vector<8x192xf32>
    %220 = vector.extract_strided_slice %211 {offsets = [0, 192], sizes = [8, 64], strides = [1, 1]} : vector<8x256xf32> to vector<8x64xf32>
    %221 = math.tanh %220 : vector<8x64xf32>
    %222 = vector.extract_strided_slice %219 {offsets = [0, 0], sizes = [8, 64], strides = [1, 1]} : vector<8x192xf32> to vector<8x64xf32>
    %223 = vector.extract_strided_slice %219 {offsets = [0, 64], sizes = [8, 64], strides = [1, 1]} : vector<8x192xf32> to vector<8x64xf32>
    %224 = vector.extract_strided_slice %219 {offsets = [0, 128], sizes = [8, 64], strides = [1, 1]} : vector<8x192xf32> to vector<8x64xf32>
    %225 = arith.mulf %223, %184 : vector<8x64xf32>
    %226 = arith.mulf %222, %221 : vector<8x64xf32>
    %227 = arith.addf %225, %226 : vector<8x64xf32>
    %228 = math.tanh %227 : vector<8x64xf32>
    %229 = arith.mulf %224, %228 : vector<8x64xf32>
    %230 = vector.extract_strided_slice %10 {offsets = [40, 0], sizes = [8, 256], strides = [1, 1]} : vector<64x256xf32> to vector<8x256xf32>
    %cst_59 = arith.constant dense<0.000000e+00> : vector<8x256xf32>
    %231 = tpu.matmul %207, %1, %cst_59 {dimension_numbers = #tpu.dot_dimension_numbers<[1], [0], [0], [1], [0, 0, 1, 1], [], []>} : vector<8x64xf32>, vector<64x256xf32>, vector<8x256xf32> -> vector<8x256xf32>
    %232 = arith.addf %230, %231 : vector<8x256xf32>
    %233 = vector.extract_strided_slice %232 {offsets = [0, 0], sizes = [8, 192], strides = [1, 1]} : vector<8x256xf32> to vector<8x192xf32>
    %cst_60 = arith.constant 5.000000e-01 : f32
    %234 = vector.broadcast %cst_60 : f32 to vector<8x192xf32>
    %235 = arith.mulf %234, %233 : vector<8x192xf32>
    %236 = math.tanh %235 : vector<8x192xf32>
    %cst_61 = arith.constant 5.000000e-01 : f32
    %237 = vector.broadcast %cst_61 : f32 to vector<8x192xf32>
    %238 = arith.mulf %237, %236 : vector<8x192xf32>
    %cst_62 = arith.constant 5.000000e-01 : f32
    %239 = vector.broadcast %cst_62 : f32 to vector<8x192xf32>
    %240 = arith.addf %238, %239 : vector<8x192xf32>
    %241 = vector.extract_strided_slice %232 {offsets = [0, 192], sizes = [8, 64], strides = [1, 1]} : vector<8x256xf32> to vector<8x64xf32>
    %242 = math.tanh %241 : vector<8x64xf32>
    %243 = vector.extract_strided_slice %240 {offsets = [0, 0], sizes = [8, 64], strides = [1, 1]} : vector<8x192xf32> to vector<8x64xf32>
    %244 = vector.extract_strided_slice %240 {offsets = [0, 64], sizes = [8, 64], strides = [1, 1]} : vector<8x192xf32> to vector<8x64xf32>
    %245 = vector.extract_strided_slice %240 {offsets = [0, 128], sizes = [8, 64], strides = [1, 1]} : vector<8x192xf32> to vector<8x64xf32>
    %246 = arith.mulf %244, %205 : vector<8x64xf32>
    %247 = arith.mulf %243, %242 : vector<8x64xf32>
    %248 = arith.addf %246, %247 : vector<8x64xf32>
    %249 = math.tanh %248 : vector<8x64xf32>
    %250 = arith.mulf %245, %249 : vector<8x64xf32>
    %251 = tpu.concatenate %250, %229 in 1 : vector<8x64xf32>, vector<8x64xf32> -> vector<8x128xf32>
    %cst_63 = arith.constant dense<0.000000e+00> : vector<8x256xf32>
    %252 = tpu.matmul %251, %3, %cst_63 {dimension_numbers = #tpu.dot_dimension_numbers<[1], [0], [0], [1], [0, 0, 1, 1], [], []>} : vector<8x128xf32>, vector<128x256xf32>, vector<8x256xf32> -> vector<8x256xf32>
    %253 = vector.broadcast %4 : vector<1x256xf32> to vector<8x256xf32>
    %254 = arith.addf %252, %253 : vector<8x256xf32>
    %255 = vector.extract_strided_slice %254 {offsets = [0, 0], sizes = [8, 192], strides = [1, 1]} : vector<8x256xf32> to vector<8x192xf32>
    %cst_64 = arith.constant 5.000000e-01 : f32
    %256 = vector.broadcast %cst_64 : f32 to vector<8x192xf32>
    %257 = arith.mulf %256, %255 : vector<8x192xf32>
    %258 = math.tanh %257 : vector<8x192xf32>
    %cst_65 = arith.constant 5.000000e-01 : f32
    %259 = vector.broadcast %cst_65 : f32 to vector<8x192xf32>
    %260 = arith.mulf %259, %258 : vector<8x192xf32>
    %cst_66 = arith.constant 5.000000e-01 : f32
    %261 = vector.broadcast %cst_66 : f32 to vector<8x192xf32>
    %262 = arith.addf %260, %261 : vector<8x192xf32>
    %263 = vector.extract_strided_slice %254 {offsets = [0, 192], sizes = [8, 64], strides = [1, 1]} : vector<8x256xf32> to vector<8x64xf32>
    %264 = math.tanh %263 : vector<8x64xf32>
    %265 = vector.extract_strided_slice %262 {offsets = [0, 0], sizes = [8, 64], strides = [1, 1]} : vector<8x192xf32> to vector<8x64xf32>
    %266 = vector.extract_strided_slice %262 {offsets = [0, 64], sizes = [8, 64], strides = [1, 1]} : vector<8x192xf32> to vector<8x64xf32>
    %267 = vector.extract_strided_slice %262 {offsets = [0, 128], sizes = [8, 64], strides = [1, 1]} : vector<8x192xf32> to vector<8x64xf32>
    %268 = arith.mulf %266, %227 : vector<8x64xf32>
    %269 = arith.mulf %265, %264 : vector<8x64xf32>
    %270 = arith.addf %268, %269 : vector<8x64xf32>
    %271 = math.tanh %270 : vector<8x64xf32>
    %272 = arith.mulf %267, %271 : vector<8x64xf32>
    %273 = vector.extract_strided_slice %10 {offsets = [48, 0], sizes = [8, 256], strides = [1, 1]} : vector<64x256xf32> to vector<8x256xf32>
    %cst_67 = arith.constant dense<0.000000e+00> : vector<8x256xf32>
    %274 = tpu.matmul %250, %1, %cst_67 {dimension_numbers = #tpu.dot_dimension_numbers<[1], [0], [0], [1], [0, 0, 1, 1], [], []>} : vector<8x64xf32>, vector<64x256xf32>, vector<8x256xf32> -> vector<8x256xf32>
    %275 = arith.addf %273, %274 : vector<8x256xf32>
    %276 = vector.extract_strided_slice %275 {offsets = [0, 0], sizes = [8, 192], strides = [1, 1]} : vector<8x256xf32> to vector<8x192xf32>
    %cst_68 = arith.constant 5.000000e-01 : f32
    %277 = vector.broadcast %cst_68 : f32 to vector<8x192xf32>
    %278 = arith.mulf %277, %276 : vector<8x192xf32>
    %279 = math.tanh %278 : vector<8x192xf32>
    %cst_69 = arith.constant 5.000000e-01 : f32
    %280 = vector.broadcast %cst_69 : f32 to vector<8x192xf32>
    %281 = arith.mulf %280, %279 : vector<8x192xf32>
    %cst_70 = arith.constant 5.000000e-01 : f32
    %282 = vector.broadcast %cst_70 : f32 to vector<8x192xf32>
    %283 = arith.addf %281, %282 : vector<8x192xf32>
    %284 = vector.extract_strided_slice %275 {offsets = [0, 192], sizes = [8, 64], strides = [1, 1]} : vector<8x256xf32> to vector<8x64xf32>
    %285 = math.tanh %284 : vector<8x64xf32>
    %286 = vector.extract_strided_slice %283 {offsets = [0, 0], sizes = [8, 64], strides = [1, 1]} : vector<8x192xf32> to vector<8x64xf32>
    %287 = vector.extract_strided_slice %283 {offsets = [0, 64], sizes = [8, 64], strides = [1, 1]} : vector<8x192xf32> to vector<8x64xf32>
    %288 = vector.extract_strided_slice %283 {offsets = [0, 128], sizes = [8, 64], strides = [1, 1]} : vector<8x192xf32> to vector<8x64xf32>
    %289 = arith.mulf %287, %248 : vector<8x64xf32>
    %290 = arith.mulf %286, %285 : vector<8x64xf32>
    %291 = arith.addf %289, %290 : vector<8x64xf32>
    %292 = math.tanh %291 : vector<8x64xf32>
    %293 = arith.mulf %288, %292 : vector<8x64xf32>
    %294 = tpu.concatenate %293, %272 in 1 : vector<8x64xf32>, vector<8x64xf32> -> vector<8x128xf32>
    %cst_71 = arith.constant dense<0.000000e+00> : vector<8x256xf32>
    %295 = tpu.matmul %294, %3, %cst_71 {dimension_numbers = #tpu.dot_dimension_numbers<[1], [0], [0], [1], [0, 0, 1, 1], [], []>} : vector<8x128xf32>, vector<128x256xf32>, vector<8x256xf32> -> vector<8x256xf32>
    %296 = vector.broadcast %4 : vector<1x256xf32> to vector<8x256xf32>
    %297 = arith.addf %295, %296 : vector<8x256xf32>
    %298 = vector.extract_strided_slice %297 {offsets = [0, 0], sizes = [8, 192], strides = [1, 1]} : vector<8x256xf32> to vector<8x192xf32>
    %cst_72 = arith.constant 5.000000e-01 : f32
    %299 = vector.broadcast %cst_72 : f32 to vector<8x192xf32>
    %300 = arith.mulf %299, %298 : vector<8x192xf32>
    %301 = math.tanh %300 : vector<8x192xf32>
    %cst_73 = arith.constant 5.000000e-01 : f32
    %302 = vector.broadcast %cst_73 : f32 to vector<8x192xf32>
    %303 = arith.mulf %302, %301 : vector<8x192xf32>
    %cst_74 = arith.constant 5.000000e-01 : f32
    %304 = vector.broadcast %cst_74 : f32 to vector<8x192xf32>
    %305 = arith.addf %303, %304 : vector<8x192xf32>
    %306 = vector.extract_strided_slice %297 {offsets = [0, 192], sizes = [8, 64], strides = [1, 1]} : vector<8x256xf32> to vector<8x64xf32>
    %307 = math.tanh %306 : vector<8x64xf32>
    %308 = vector.extract_strided_slice %305 {offsets = [0, 0], sizes = [8, 64], strides = [1, 1]} : vector<8x192xf32> to vector<8x64xf32>
    %309 = vector.extract_strided_slice %305 {offsets = [0, 64], sizes = [8, 64], strides = [1, 1]} : vector<8x192xf32> to vector<8x64xf32>
    %310 = vector.extract_strided_slice %305 {offsets = [0, 128], sizes = [8, 64], strides = [1, 1]} : vector<8x192xf32> to vector<8x64xf32>
    %311 = arith.mulf %309, %270 : vector<8x64xf32>
    %312 = arith.mulf %308, %307 : vector<8x64xf32>
    %313 = arith.addf %311, %312 : vector<8x64xf32>
    %314 = math.tanh %313 : vector<8x64xf32>
    %315 = arith.mulf %310, %314 : vector<8x64xf32>
    %316 = vector.extract_strided_slice %10 {offsets = [56, 0], sizes = [8, 256], strides = [1, 1]} : vector<64x256xf32> to vector<8x256xf32>
    %cst_75 = arith.constant dense<0.000000e+00> : vector<8x256xf32>
    %317 = tpu.matmul %293, %1, %cst_75 {dimension_numbers = #tpu.dot_dimension_numbers<[1], [0], [0], [1], [0, 0, 1, 1], [], []>} : vector<8x64xf32>, vector<64x256xf32>, vector<8x256xf32> -> vector<8x256xf32>
    %318 = arith.addf %316, %317 : vector<8x256xf32>
    %319 = vector.extract_strided_slice %318 {offsets = [0, 0], sizes = [8, 192], strides = [1, 1]} : vector<8x256xf32> to vector<8x192xf32>
    %cst_76 = arith.constant 5.000000e-01 : f32
    %320 = vector.broadcast %cst_76 : f32 to vector<8x192xf32>
    %321 = arith.mulf %320, %319 : vector<8x192xf32>
    %322 = math.tanh %321 : vector<8x192xf32>
    %cst_77 = arith.constant 5.000000e-01 : f32
    %323 = vector.broadcast %cst_77 : f32 to vector<8x192xf32>
    %324 = arith.mulf %323, %322 : vector<8x192xf32>
    %cst_78 = arith.constant 5.000000e-01 : f32
    %325 = vector.broadcast %cst_78 : f32 to vector<8x192xf32>
    %326 = arith.addf %324, %325 : vector<8x192xf32>
    %327 = vector.extract_strided_slice %318 {offsets = [0, 192], sizes = [8, 64], strides = [1, 1]} : vector<8x256xf32> to vector<8x64xf32>
    %328 = math.tanh %327 : vector<8x64xf32>
    %329 = vector.extract_strided_slice %326 {offsets = [0, 0], sizes = [8, 64], strides = [1, 1]} : vector<8x192xf32> to vector<8x64xf32>
    %330 = vector.extract_strided_slice %326 {offsets = [0, 64], sizes = [8, 64], strides = [1, 1]} : vector<8x192xf32> to vector<8x64xf32>
    %331 = vector.extract_strided_slice %326 {offsets = [0, 128], sizes = [8, 64], strides = [1, 1]} : vector<8x192xf32> to vector<8x64xf32>
    %332 = arith.mulf %330, %291 : vector<8x64xf32>
    %333 = arith.mulf %329, %328 : vector<8x64xf32>
    %334 = arith.addf %332, %333 : vector<8x64xf32>
    %335 = math.tanh %334 : vector<8x64xf32>
    %336 = arith.mulf %331, %335 : vector<8x64xf32>
    %337 = tpu.concatenate %336, %315 in 1 : vector<8x64xf32>, vector<8x64xf32> -> vector<8x128xf32>
    %cst_79 = arith.constant dense<0.000000e+00> : vector<8x256xf32>
    %338 = tpu.matmul %337, %3, %cst_79 {dimension_numbers = #tpu.dot_dimension_numbers<[1], [0], [0], [1], [0, 0, 1, 1], [], []>} : vector<8x128xf32>, vector<128x256xf32>, vector<8x256xf32> -> vector<8x256xf32>
    %339 = vector.broadcast %4 : vector<1x256xf32> to vector<8x256xf32>
    %340 = arith.addf %338, %339 : vector<8x256xf32>
    %341 = vector.extract_strided_slice %340 {offsets = [0, 0], sizes = [8, 192], strides = [1, 1]} : vector<8x256xf32> to vector<8x192xf32>
    %cst_80 = arith.constant 5.000000e-01 : f32
    %342 = vector.broadcast %cst_80 : f32 to vector<8x192xf32>
    %343 = arith.mulf %342, %341 : vector<8x192xf32>
    %344 = math.tanh %343 : vector<8x192xf32>
    %cst_81 = arith.constant 5.000000e-01 : f32
    %345 = vector.broadcast %cst_81 : f32 to vector<8x192xf32>
    %346 = arith.mulf %345, %344 : vector<8x192xf32>
    %cst_82 = arith.constant 5.000000e-01 : f32
    %347 = vector.broadcast %cst_82 : f32 to vector<8x192xf32>
    %348 = arith.addf %346, %347 : vector<8x192xf32>
    %349 = vector.extract_strided_slice %340 {offsets = [0, 192], sizes = [8, 64], strides = [1, 1]} : vector<8x256xf32> to vector<8x64xf32>
    %350 = math.tanh %349 : vector<8x64xf32>
    %351 = vector.extract_strided_slice %348 {offsets = [0, 0], sizes = [8, 64], strides = [1, 1]} : vector<8x192xf32> to vector<8x64xf32>
    %352 = vector.extract_strided_slice %348 {offsets = [0, 64], sizes = [8, 64], strides = [1, 1]} : vector<8x192xf32> to vector<8x64xf32>
    %353 = vector.extract_strided_slice %348 {offsets = [0, 128], sizes = [8, 64], strides = [1, 1]} : vector<8x192xf32> to vector<8x64xf32>
    %354 = arith.mulf %352, %313 : vector<8x64xf32>
    %355 = arith.mulf %351, %350 : vector<8x64xf32>
    %356 = arith.addf %354, %355 : vector<8x64xf32>
    %357 = math.tanh %356 : vector<8x64xf32>
    %358 = arith.mulf %353, %357 : vector<8x64xf32>
    %cst_83 = arith.constant dense<0.000000e+00> : vector<8x8xf32>
    %359 = tpu.matmul %358, %5, %cst_83 {dimension_numbers = #tpu.dot_dimension_numbers<[1], [0], [0], [1], [0, 0, 1, 1], [], []>} : vector<8x64xf32>, vector<64x8xf32>, vector<8x8xf32> -> vector<8x8xf32>
    %360 = vector.broadcast %6 : vector<1x8xf32> to vector<8x8xf32>
    %361 = arith.addf %359, %360 : vector<8x8xf32>
    %c0_84 = arith.constant 0 : index
    %c0_85 = arith.constant 0 : index
    %362 = vector.load %arg8[%c0_84, %c0_85] : memref<8x8xf32, #tpu.memory_space<vmem>>, vector<8x8xf32>
    tpu.vector_store %arg8[%c0_84, %c0_85], %361 {strides = array<i32>} : memref<8x8xf32, #tpu.memory_space<vmem>>, vector<8x8xf32>,
    return
  }
}

</mosaic_0001>

<bundles_post_ra>
// kernel: tpu_custom_call.1
= control target key start
LH: loop header
LB: loop body
LE: loop exit
PB: predicated region body
PF: predicated region fallthrough
CT: control target
= control target key end

     0   :  { %13 = vsyncpa [#allocation3], 0  ;;  %s3364_s0 = inlined_call_operand.vmem [shape: f32[64,40], index: 0, kind: input, shape index: {}]   ;;  %s3365_s1 = inlined_call_operand.hbm [shape: f32[40,256], index: 1, kind: input, shape index: {}]   ;;  %s3366_s2 = inlined_call_operand.vmem [shape: f32[64,256], index: 2, kind: input, shape index: {}]   ;;  %s3367_s3 = inlined_call_operand.vmem [shape: f32[1,256], index: 3, kind: input, shape index: {}]   ;;  %s3368_s4 = inlined_call_operand.hbm [shape: f32[128,256], index: 4, kind: input, shape index: {}]   ;;  %s3369_s5 = inlined_call_operand.vmem [shape: f32[1,256], index: 5, kind: input, shape index: {}]   ;;  %s3370_s6 = inlined_call_operand.vmem [shape: f32[64,8], index: 6, kind: input, shape index: {}]   ;;  %s3371_s7 = inlined_call_operand.vmem [shape: f32[1,8], index: 7, kind: input, shape index: {}]   ;;  %s3372_s8 = inlined_call_operand.hbm [shape: f32[8,8], index: 8, kind: output, shape index: {}]  }
   0x1   :  { %14 = vsyncpa [#allocation6], 0 }
   0x2   :  { %15 = vsyncpa [#allocation4], 0  ;;  %s2712_s27 = smov [#allocation2]   ;;  %s2640_s9 = scalar_lea.hbm %s3365_s1, 1280 }
   0x3   :  { %s23_s28 = sshll.u32 %s2712_s27, 4  ;;  %p2641_p0 = scmp.ne.s32.totalorder %s3365_s1, %s2640_s9  ;;  %s24_s28 = int_to_ptr.vmem [resolvable:$true] %s23_s28 }
   0x4   :  { %p2644_p1 = scmp.lt.u32.totalorder %s2640_s9, %s3365_s1 }
   0x6   :  { %p2646_p2 = pnand %p2644_p1, %p2641_p0 }
   0x8   :  { %2649 = shalt.err (!%p2646_p2)
}
   0x9   :  { %s2650_s14 = scalar_lea.vmem %s24_s28, 1280  ;;  %p2655_p4 = scmp.lt.s32.totalorder %s24_s28, %s24_s28 }
   0xa   :  { %p2651_p3 = scmp.ne.s32.totalorder %s24_s28, %s2650_s14  ;;  %p2656_p5 = scmp.lt.s32.totalorder %s2650_s14, %s2650_s14 }
   0xc   :  { %p2657_p6 = por %p2656_p5, %p2655_p4 }
   0xe   :  { %p2658_p7 = pnand %p2657_p6, %p2651_p3 }
  0x10   :  { %2661 = shalt.err (!%p2658_p7)
}
  0x11   :  { %s2713_s15 = smov 256   ;;  %s2714_s16 = smov 16  }
  0x12   :  { %29 = dma.hbm_to_vmem [thread:$0]  %s3365_s1, 1280, %s24_s28, [#allocation3], %s2713_s15, %s2713_s15, %s2714_s16  }
  0x13   :  { %s2715_s19 = smov [#allocation5]   ;;  %s2662_s23 = scalar_lea.hbm %s3368_s4, 4096 }
  0x14   :  { %s39_s20 = sshll.u32 %s2715_s19, 4  ;;  %p2663_p8 = scmp.ne.s32.totalorder %s3368_s4, %s2662_s23  ;;  %s40_s20 = int_to_ptr.vmem [resolvable:$true] %s39_s20 }
  0x15   :  { %p2666_p9 = scmp.lt.u32.totalorder %s2662_s23, %s3368_s4 }
  0x17   :  { %p2668_p10 = pnand %p2666_p9, %p2663_p8 }
  0x19   :  { %2671 = shalt.err (!%p2668_p10)
}
  0x1a   :  { %s2672_s29 = scalar_lea.vmem %s40_s20, 4096  ;;  %p2677_p12 = scmp.lt.s32.totalorder %s40_s20, %s40_s20 }
  0x1b   :  { %p2673_p11 = scmp.ne.s32.totalorder %s40_s20, %s2672_s29  ;;  %p2678_p13 = scmp.lt.s32.totalorder %s2672_s29, %s2672_s29 }
  0x1d   :  { %p2679_p0 = por %p2678_p13, %p2677_p12 }
  0x1f   :  { %p2680_p1 = pnand %p2679_p0, %p2673_p11 }
  0x21   :  { %2683 = shalt.err (!%p2680_p1)
}
  0x22   :  { %45 = dma.hbm_to_vmem [thread:$0]  %s3368_s4, 4096, %s40_s20, [#allocation6], %s2713_s15, %s2713_s15, %s2714_s16  }
  0x23   :  { %2706 = dma.done.wait [#allocation3], 1280  }
  0x24   :  { %2707 = vsyncadd [#allocation3], 4294966016 }
  0x25   :  { %2708 = dma.done.wait [#allocation6], 4096  }
  0x26   :  { %2709 = vsyncadd [#allocation6], 4294963200  ;;  %v2716_v0 = vmov 0.0   ;;  %v59_v1 = vld [vmem:[#allocation2 + $0x8] sm:$0xff]  ;;  %v61_v2 = vld [vmem:[#allocation2 + $0x18] sm:$0xff]  ;;  %vm146_vm0 = vcmask 326656   ;;  %v136_v47 = vlaneseq }
  0x27   :  { %235 = vmatprep.mubr.f32.mxu0 %v2716_v0  ;;  %463 = vmatprep.mubr.f32.mxu1 %v2716_v0  ;;  %v58_v3 = vld [vmem:[#allocation2] sm:$0xff]  ;;  %v2067_v4 = vpack.c.bf16 %v61_v2, %v59_v1  ;;  %v60_v5 = vld [vmem:[#allocation2 + $0x10] sm:$0xff]  ;;  %v63_v6 = vld [vmem:[#allocation2 + $0x28] sm:$0xff]  ;;  %s2717_s4 = smov 64   ;;  %vm284_vm1 = vcmask 523264   ;;  %vm2719_vm2 = vmmov 0  }
  0x28   :  { %v65_v7 = vld [vmem:[#allocation2 + $0x38] sm:$0xff]  ;;  %v2069_v8 = vpack.c.bf16 %v60_v5, %v58_v3  ;;  %v62_v10 = vld [vmem:[#allocation2 + $0x20] sm:$0xff]  ;;  %v64_v11 = vld [vmem:[#allocation2 + $0x30] sm:$0xff]  ;;  %v2915_v48 = vshrl.u32 %v136_v47, 7  ;;  %s2720_s24 = smov [#allocation7]   ;;  %vm2003_vm3 = vcmask 64512  }
  0x29   :  { %v2071_v9 = vpack.c.bf16 %v65_v7, %v63_v6  ;;  %2068 = vmatprep.subr.bf16.mxu0 %v2067_v4  ;;  %v2073_v12 = vpack.c.bf16 %v64_v11, %v62_v10  ;;  %v67_v13 = vld [vmem:[#allocation2 + $0x48] sm:$0xff]  ;;  %v71_v15 = vld [vmem:[%s3366_s2 + $0x18] sm:$0xff]  ;;  %v68_v16 = vld [vmem:[%s3366_s2] sm:$0xff]  ;;  %s2011_s25 = sshll.u32 %s2720_s24, 4  ;;  %s2012_s25 = int_to_ptr.vmem [resolvable:$true] %s2011_s25 }
  0x2a   :  { %2070 = vmatpush1.bf16.msra.mxu0 %v2069_v8  ;;  %v69_v14 = vld [vmem:[%s3366_s2 + $0x8] sm:$0xff]  ;;  %v70_v17 = vld [vmem:[%s3366_s2 + $0x10] sm:$0xff]  ;;  %v75_v19 = vld [vmem:[%s3366_s2 + $0x38] sm:$0xff]  ;;  %v142_v49 = vsub.s32 1, %v2915_v48  ;;  %v138_v56 = vsub.s32 0, %v2915_v48  ;;  %s2684_s26 = scalar_lea.vmem %s2012_s25, 128  ;;  %p2689_p3 = scmp.lt.s32.totalorder %s2012_s25, %s2012_s25 }
  0x2b   :  { %2072 = vmatprep.subr.bf16.mxu0 %v2071_v9  ;;  %v73_v18 = vld [vmem:[%s3366_s2 + $0x28] sm:$0xff]  ;;  %v66_v20 = vld [vmem:[#allocation2 + $0x40] sm:$0xff]  ;;  %v2810_v21 = vpack.c.bf16 %v71_v15, %v69_v14  ;;  %v2815_v23 = vpack.c.bf16 %v70_v17, %v68_v16  ;;  %v74_v26 = vld [vmem:[%s3366_s2 + $0x30] sm:$0xff]  ;;  %p2685_p2 = scmp.ne.s32.totalorder %s2012_s25, %s2684_s26  ;;  %p2690_p4 = scmp.lt.s32.totalorder %s2684_s26, %s2684_s26 }
  0x2c   :  { %v127_v22 = vld [vmem:[%s3364_s0] sm:$0xff]  ;;  %v2817_v24 = vpack.c.bf16 %v75_v19, %v73_v18  ;;  %v77_v27 = vld [vmem:[%s3366_s2 + $0x48] sm:$0xff]  ;;  %v79_v28 = vld [vmem:[%s3366_s2 + $0x58] sm:$0xff] }
  0x2d   :  { %v72_v25 = vld [vmem:[%s3366_s2 + $0x20] sm:$0xff]  ;;  %v128_v29 = vld [vmem:[%s3364_s0 + $0x8] sm:$0xff]  ;;  %v2841_v31 = vpack.c.bf16 %v79_v28, %v77_v27  ;;  %v78_v33 = vld [vmem:[%s3366_s2 + $0x50] sm:$0xff]  ;;  %p2691_p5 = por %p2690_p4, %p2689_p3 }
  0x2e   :  { %2074 = vmatpush1.bf16.msra.mxu0 %v2073_v12  ;;  %v2838_v30 = vpack.c.bf16 %v74_v26, %v72_v25  ;;  %v76_v32 = vld [vmem:[%s3366_s2 + $0x40] sm:$0xff]  ;;  %v81_v34 = vld [vmem:[%s3366_s2 + $0x68] sm:$0xff]  ;;  %v83_v35 = vld [vmem:[%s3366_s2 + $0x78] sm:$0xff] }
  0x2f   :  { %179 = vmatprep.subr.mxu0 %v67_v13  ;;  %v129_v36 = vld [vmem:[%s3364_s0 + $0x10] sm:$0xff]  ;;  %v2861_v37 = vpack.c.bf16 %v78_v33, %v76_v32  ;;  %v2864_v38 = vpack.c.bf16 %v83_v35, %v81_v34  ;;  %v80_v39 = vld [vmem:[%s3366_s2 + $0x60] sm:$0xff]  ;;  %v130_v41 = vld [vmem:[%s3364_s0 + $0x18] sm:$0xff]  ;;  %p2692_p6 = pnand %p2691_p5, %p2685_p2 }
  0x30   :  { %v82_v40 = vld [vmem:[%s3366_s2 + $0x70] sm:$0xff]  ;;  %v131_v43 = vld [vmem:[%s3364_s0 + $0x20] sm:$0xff]  ;;  %v132_v44 = vld [vmem:[%s3364_s0 + $0x28] sm:$0xff] }
  0x31   :  { %v2878_v42 = vpack.c.bf16 %v82_v40, %v80_v39  ;;  %v133_v45 = vld [vmem:[%s3364_s0 + $0x30] sm:$0xff]  ;;  %v134_v46 = vld [vmem:[%s3364_s0 + $0x38] sm:$0xff]  ;;  %v84_v50 = vld [vmem:[%s3367_s3] sm:$0x3] }
  0x32   :  { %180 = vmatpush1.msra.mxu0 %v66_v20  ;;  %v2923_v51 = vrot.slane %v84_v50, %v142_v49  ;;  %v2933_v57 = vrot.slane %v84_v50, %v138_v56  ;;  %v86_v2 = vld [vmem:[#allocation5 + $0x8] sm:$0xff]  ;;  %v88_v3 = vld [vmem:[#allocation5 + $0x18] sm:$0xff]  ;;  %v85_v4 = vld [vmem:[#allocation5] sm:$0xff] }
  0x33   :  { %2021 = vmatmul.mubr.msk.f32.vlgmr.msra.gmra.mrb[0].mxu0 %vm146_vm0, %v127_v22  ;;  %2076 = vmatprep.subr.bf16.mxu0 %v2810_v21  ;;  %v2940_v5 = vpack.c.bf16 %v88_v3, %v86_v2  ;;  %v87_v6 = vld [vmem:[#allocation5 + $0x10] sm:$0xff]  ;;  %v90_v7 = vld [vmem:[#allocation5 + $0x28] sm:$0xff]  ;;  %v92_v8 = vld [vmem:[#allocation5 + $0x38] sm:$0xff] }
  0x34   :  { %2078 = vmatpush1.bf16.msra.mxu0 %v2815_v23  ;;  %241 = vmatprep.mubr.f32.mxu0 %v2716_v0  ;;  %v2942_v9 = vpack.c.bf16 %v87_v6, %v85_v4  ;;  %v2944_v10 = vpack.c.bf16 %v92_v8, %v90_v7  ;;  %v89_v11 = vld [vmem:[#allocation5 + $0x20] sm:$0xff]  ;;  %v91_v12 = vld [vmem:[#allocation5 + $0x30] sm:$0xff]  ;;  %v94_v13 = vld [vmem:[#allocation5 + $0x48] sm:$0xff] }
  0x35   :  { %2080 = vmatprep.subr.bf16.mxu0 %v2817_v24  ;;  %2092 = vmatprep.subr.bf16.mxu1 %v2940_v5  ;;  %v96_v14 = vld [vmem:[#allocation5 + $0x58] sm:$0xff]  ;;  %v2948_v15 = vpack.c.bf16 %v91_v12, %v89_v11  ;;  %v93_v17 = vld [vmem:[#allocation5 + $0x40] sm:$0xff]  ;;  %v95_v18 = vld [vmem:[#allocation5 + $0x50] sm:$0xff] }
  0x36   :  { %2094 = vmatpush1.bf16.msra.mxu1 %v2942_v9  ;;  %v2951_v16 = vpack.c.bf16 %v96_v14, %v94_v13  ;;  %v98_v19 = vld [vmem:[#allocation5 + $0x68] sm:$0xff]  ;;  %v100_v20 = vld [vmem:[#allocation5 + $0x78] sm:$0xff]  ;;  %v2954_v22 = vpack.c.bf16 %v95_v18, %v93_v17  ;;  %v97_v26 = vld [vmem:[#allocation5 + $0x60] sm:$0xff] }
  0x37   :  { %2022 = vmatmul.mubr.msk.f32.gmra.mrb[2].mxu0 %vm146_vm0, %v128_v29  ;;  %2096 = vmatprep.subr.bf16.mxu1 %v2944_v10  ;;  %v2957_v25 = vpack.c.bf16 %v100_v20, %v98_v19  ;;  %v99_v27 = vld [vmem:[#allocation5 + $0x70] sm:$0xff]  ;;  %v102_v28 = vld [vmem:[#allocation5 + $0x88] sm:$0xff]  ;;  %v104_v29 = vld [vmem:[#allocation5 + $0x98] sm:$0xff] }
  0x38   :  { %247 = vmatprep.mubr.f32.mxu0 %v2716_v0  ;;  %2082 = vmatpush1.bf16.msra.mxu0 %v2838_v30  ;;  %v2960_v32 = vpack.c.bf16 %v99_v27, %v97_v26  ;;  %v2963_v33 = vpack.c.bf16 %v104_v29, %v102_v28  ;;  %v101_v34 = vld [vmem:[#allocation5 + $0x80] sm:$0xff]  ;;  %v103_v35 = vld [vmem:[#allocation5 + $0x90] sm:$0xff]  ;;  %v108_v39 = vld [vmem:[#allocation5 + $0xb8] sm:$0xff] }
  0x39   :  { %2084 = vmatprep.subr.bf16.mxu0 %v2841_v31  ;;  %v2966_v40 = vpack.c.bf16 %v103_v35, %v101_v34 }
  0x3a   :  { %2098 = vmatpush1.bf16.msra.mxu1 %v2948_v15 }
  0x3b   :  { %2023 = vmatmul.mubr.msk.f32.gmra.mrb[4].mxu0 %vm146_vm0, %v129_v36  ;;  %2100 = vmatprep.subr.bf16.mxu1 %v2951_v16  ;;  %v106_v36 = vld [vmem:[#allocation5 + $0xa8] sm:$0xff] }
  0x3c   :  { %253 = vmatprep.mubr.f32.mxu0 %v2716_v0  ;;  %2086 = vmatpush1.bf16.msra.mxu0 %v2861_v37 }
  0x3d   :  { %2088 = vmatprep.subr.bf16.mxu0 %v2864_v38 }
  0x3e   :  { %2102 = vmatpush1.bf16.msra.mxu1 %v2954_v22 }
  0x3f   :  { %2024 = vmatmul.mubr.msk.f32.gmra.mrb[6].mxu0 %vm146_vm0, %v130_v41  ;;  %2104 = vmatprep.subr.bf16.mxu1 %v2957_v25  ;;  %v2969_v41 = vpack.c.bf16 %v108_v39, %v106_v36 }
  0x40   :  { %259 = vmatprep.mubr.f32.mxu0 %v2716_v0  ;;  %2090 = vmatpush1.bf16.msra.mxu0 %v2878_v42 }
  0x41   :  { %2124 = vmatprep.subr.bf16.mxu0 %v2810_v21 }
  0x42   :  { %2106 = vmatpush1.bf16.msra.mxu1 %v2960_v32 }
  0x43   :  { %2025 = vmatmul.mubr.msk.f32.gmra.mrb[8].mxu0 %vm146_vm0, %v131_v43  ;;  %2108 = vmatprep.subr.bf16.mxu1 %v2963_v33  ;;  %v105_v43 = vld [vmem:[#allocation5 + $0xa0] sm:$0xff] }
  0x44   :  { %265 = vmatprep.mubr.f32.mxu0 %v2716_v0 }
  0x46   :  { %2110 = vmatpush1.bf16.msra.mxu1 %v2966_v40 }
  0x47   :  { %2026 = vmatmul.mubr.msk.f32.gmra.mrb[10].mxu0 %vm146_vm0, %v132_v44  ;;  %v107_v44 = vld [vmem:[#allocation5 + $0xb0] sm:$0xff]  ;;  %2112 = vmatprep.subr.bf16.mxu1 %v2969_v41 }
  0x48   :  { %271 = vmatprep.mubr.f32.mxu0 %v2716_v0  ;;  %v2972_v47 = vpack.c.bf16 %v107_v44, %v105_v43 }
  0x4a   :  { %2114 = vmatpush1.bf16.msra.mxu1 %v2972_v47 }
  0x4b   :  { %2027 = vmatmul.mubr.msk.f32.gmra.mrb[12].mxu0 %vm146_vm0, %v133_v45  ;;  %v110_v45 = vld [vmem:[#allocation5 + $0xc8] sm:$0xff] }
  0x4c   :  { %277 = vmatprep.mubr.f32.mxu0 %v2716_v0 }
  0x4f   :  { %2028 = vmatmul.mubr.msk.f32.gmra.mrb[14].mxu0 %vm146_vm0, %v134_v46  ;;  %v112_v46 = vld [vmem:[#allocation5 + $0xd8] sm:$0xff] }
  0x50   :  { %352 = vmatprep.mubr.f32.mxu0 %v2716_v0  ;;  %v2975_v50 = vpack.c.bf16 %v112_v46, %v110_v45 }
  0x52   :  { %2116 = vmatprep.subr.bf16.mxu1 %v2975_v50 }
  0x53   :  { %353 = vmatmul.mubr.f32.vlgmr.msra.gmra.mrb[0].mxu0 %v2716_v0 }
  0x54   :  { %2126 = vmatpush1.bf16.msra.mxu0 %v2815_v23  ;;  %563 = vmatprep.mubr.f32.mxu0 %v2716_v0 }
  0x55   :  { %2128 = vmatprep.subr.bf16.mxu0 %v2817_v24 }
  0x58   :  { %2130 = vmatpush1.bf16.msra.mxu0 %v2838_v30 }
  0x59   :  { %2132 = vmatprep.subr.bf16.mxu0 %v2841_v31 }
  0x5c   :  { %2134 = vmatpush1.bf16.msra.mxu0 %v2861_v37 }
  0x5d   :  { %2136 = vmatprep.subr.bf16.mxu0 %v2864_v38 }
  0x60   :  { %2138 = vmatpush1.bf16.msra.mxu0 %v2878_v42 }
  0x61   :  { %2172 = vmatprep.subr.bf16.mxu0 %v2810_v21 }
 0x126   :  { %v354_v52 = vpop.f32.mrb[0].mxu0 }
 0x127   :  { %v356_v53 = vpop.f32.mrb[1].mxu0  ;;  %v2471_v58 = vadd.f32 %v354_v52, %v2933_v57  ;;  %v109_v52 = vld [vmem:[#allocation5 + $0xc0] sm:$0xff] }
 0x128   :  { %v2926_v54 = vadd.f32 %v356_v53, %v2923_v51  ;;  %v111_v53 = vld [vmem:[#allocation5 + $0xd0] sm:$0xff] }
 0x129   :  { %v361_v59 = vmul.f32 0.5, %v2471_v58  ;;  %v116_v58 = vld [vmem:[#allocation5 + $0xf8] sm:$0xff] }
 0x12a   :  { %2512 = vtanh.f32 %v2926_v54  ;;  %v362_v7 = vmul.f32 0.5, %v2926_v54  ;;  %v117_v54 = vld [vmem:[%s3369_s5] sm:$0x3] }
 0x12b   :  { %2514 = vtanh.f32 %v361_v59  ;;  %v2978_v59 = vpack.c.bf16 %v111_v53, %v109_v52 }
 0x12d   :  { %2118 = vmatpush1.bf16.msra.mxu1 %v2978_v59 }
 0x134   :  { %v2513_v55 = vpop.eup %2512 }
 0x135   :  { %372 = vrot.lane.b32.xlu0 %v2513_v55, %s2717_s4  ;;  %v2515_v60 = vpop.eup %2514  ;;  %v114_v55 = vld [vmem:[#allocation5 + $0xe8] sm:$0xff] }
 0x136   :  { %v365_v61 = vmul.f32 0.5, %v2515_v60  ;;  %v2981_v60 = vpack.c.bf16 %v116_v58, %v114_v55 }
 0x138   :  { %v2936_v62 = vadd.f32 0.5, %v365_v61  ;;  %v113_v61 = vld [vmem:[#allocation5 + $0xe0] sm:$0xff]  ;;  %2120 = vmatprep.subr.bf16.mxu1 %v2981_v60 }
 0x13a   :  { %v370_v2 = vmul.f32 0.0, %v2936_v62 }
 0x1a7   :  { %v373_v63 = vpop.permute.xlu0 %372 }
 0x1a8   :  { %v375_v1 = vmul.f32 %v373_v63, %v2936_v62  ;;  %v115_v63 = vld [vmem:[#allocation5 + $0xf0] sm:$0xff]  ;;  %v3028_v62 = vrot.slane %v117_v54, %v142_v49  ;;  %v3036_v49 = vrot.slane %v117_v54, %v138_v56 }
 0x1aa   :  { %377 = vrot.lane.b32.xlu0 %v375_v1, %s2717_s4  ;;  %v2984_v1 = vpack.c.bf16 %v115_v63, %v113_v61 }
 0x1ac   :  { %2122 = vmatpush1.bf16.msra.mxu1 %v2984_v1 }
 0x1ad   :  { %2140 = vmatprep.subr.bf16.mxu1 %v2940_v5 }
 0x21c   :  { %v378_v3 = vpop.permute.xlu0 %377 }
 0x21d   :  { %v2990_v4 = vadd.f32 %v378_v3, %v370_v2 }
 0x21f   :  { %2516 = vtanh.f32 %v2990_v4 }
 0x220   :  { %2518 = vtanh.f32 %v362_v7 }
 0x229   :  { %v2517_v6 = vpop.eup %2516 }
 0x22a   :  { %383 = vrot.lane.b32.xlu1 %v2517_v6, %s2717_s4  ;;  %v2519_v8 = vpop.eup %2518 }
 0x22b   :  { %v366_v11 = vmul.f32 0.5, %v2519_v8 }
 0x22d   :  { %v368_v12 = vadd.f32 0.5, %v366_v11 }
 0x29c   :  { %v384_v13 = vpop.permute.xlu1 %383 }
 0x29d   :  { %v386_v14 = vmul.f32 %v384_v13, %v368_v12 }
 0x29f   :  { %2029 = vmatmul.mubr.msk.f32.vlgmr.msra.gmra.mrb[0].mxu1 %vm284_vm1, %v386_v14  ;;  %2030 = vmatmul.mubr.msk.f32.vlgmr.msra.gmra.mrb[2].mxu0 %vm284_vm1, %v386_v14 }
 0x2a0   :  { %2174 = vmatpush1.bf16.msra.mxu0 %v2815_v23  ;;  %767 = vmatprep.mubr.f32.mxu0 %v2716_v0 }
 0x2a1   :  { %2176 = vmatprep.subr.bf16.mxu0 %v2817_v24  ;;  %2142 = vmatpush1.bf16.msra.mxu1 %v2942_v9 }
 0x2a2   :  { %2144 = vmatprep.subr.bf16.mxu1 %v2944_v10  ;;  %667 = vmatprep.mubr.f32.mxu1 %v2716_v0 }
 0x2a4   :  { %2178 = vmatpush1.bf16.msra.mxu0 %v2838_v30 }
 0x2a5   :  { %2180 = vmatprep.subr.bf16.mxu0 %v2841_v31  ;;  %2146 = vmatpush1.bf16.msra.mxu1 %v2948_v15 }
 0x2a6   :  { %2148 = vmatprep.subr.bf16.mxu1 %v2951_v16 }
 0x2a8   :  { %2182 = vmatpush1.bf16.msra.mxu0 %v2861_v37 }
 0x2a9   :  { %2184 = vmatprep.subr.bf16.mxu0 %v2864_v38  ;;  %2150 = vmatpush1.bf16.msra.mxu1 %v2954_v22 }
 0x2aa   :  { %2152 = vmatprep.subr.bf16.mxu1 %v2957_v25 }
 0x2ac   :  { %2186 = vmatpush1.bf16.msra.mxu0 %v2878_v42 }
 0x2ad   :  { %2154 = vmatpush1.bf16.msra.mxu1 %v2960_v32  ;;  %2220 = vmatprep.subr.bf16.mxu0 %v2810_v21 }
 0x2ae   :  { %2156 = vmatprep.subr.bf16.mxu1 %v2963_v33 }
 0x2b1   :  { %2158 = vmatpush1.bf16.msra.mxu1 %v2966_v40 }
 0x2b2   :  { %2160 = vmatprep.subr.bf16.mxu1 %v2969_v41 }
 0x2b5   :  { %2162 = vmatpush1.bf16.msra.mxu1 %v2972_v47 }
 0x2b6   :  { %2164 = vmatprep.subr.bf16.mxu1 %v2975_v50 }
 0x2b9   :  { %2166 = vmatpush1.bf16.msra.mxu1 %v2978_v59 }
 0x2ba   :  { %2168 = vmatprep.subr.bf16.mxu1 %v2981_v60 }
 0x2bd   :  { %2170 = vmatpush1.bf16.msra.mxu1 %v2984_v1 }
 0x2be   :  { %2188 = vmatprep.subr.bf16.mxu1 %v2940_v5 }
 0x372   :  { %v465_v17 = vpop.f32.mrb[0].mxu1  ;;  %v565_v18 = vpop.f32.mrb[2].mxu0 }
 0x373   :  { %v467_v19 = vpop.f32.mrb[1].mxu1  ;;  %v567_v20 = vpop.f32.mrb[3].mxu0  ;;  %v466_v34 = vadd.f32 %v465_v17, %v3036_v49  ;;  %v2473_v36 = vadd.f32 %v565_v18, %v2933_v57 }
 0x374   :  { %v468_v26 = vadd.f32 %v467_v19, %v3028_v62  ;;  %v2474_v27 = vadd.f32 %v567_v20, %v2923_v51 }
 0x375   :  { %v470_v35 = vmul.f32 0.5, %v466_v34  ;;  %v572_v39 = vmul.f32 0.5, %v2473_v36 }
 0x376   :  { %2520 = vtanh.f32 %v468_v26  ;;  %v471_v12 = vmul.f32 0.5, %v468_v26  ;;  %v573_v13 = vmul.f32 0.5, %v2474_v27 }
 0x377   :  { %2522 = vtanh.f32 %v2474_v27 }
 0x378   :  { %2524 = vtanh.f32 %v470_v35 }
 0x379   :  { %2526 = vtanh.f32 %v572_v39 }
 0x380   :  { %v2521_v28 = vpop.eup %2520 }
 0x381   :  { %481 = vrot.lane.b32.xlu1 %v2521_v28, %s2717_s4  ;;  %v2523_v29 = vpop.eup %2522 }
 0x382   :  { %583 = vrot.lane.b32.xlu0 %v2523_v29, %s2717_s4  ;;  %v2525_v43 = vpop.eup %2524 }
 0x383   :  { %v474_v44 = vmul.f32 0.5, %v2525_v43  ;;  %v2527_v45 = vpop.eup %2526 }
 0x384   :  { %v576_v52 = vmul.f32 0.5, %v2527_v45 }
 0x385   :  { %v476_v46 = vadd.f32 0.5, %v474_v44 }
 0x386   :  { %v578_v48 = vadd.f32 0.5, %v576_v52 }
 0x387   :  { %v479_v61 = vmul.f32 0.0, %v476_v46 }
 0x388   :  { %v581_v3 = vmul.f32 %v578_v48, %v2990_v4 }
 0x3f3   :  { %v482_v53 = vpop.permute.xlu1 %481 }
 0x3f4   :  { %v484_v55 = vmul.f32 %v482_v53, %v476_v46  ;;  %v584_v56 = vpop.permute.xlu0 %583 }
 0x3f5   :  { %v586_v58 = vmul.f32 %v584_v56, %v578_v48 }
 0x3f6   :  { %486 = vrot.lane.b32.xlu1 %v484_v55, %s2717_s4 }
 0x3f7   :  { %588 = vrot.lane.b32.xlu0 %v586_v58, %s2717_s4 }
 0x468   :  { %v487_v63 = vpop.permute.xlu1 %486 }
 0x469   :  { %v3042_v2 = vadd.f32 %v487_v63, %v479_v61  ;;  %v589_v6 = vpop.permute.xlu0 %588 }
 0x46a   :  { %v3046_v7 = vadd.f32 %v589_v6, %v581_v3 }
 0x46b   :  { %2528 = vtanh.f32 %v3042_v2 }
 0x46c   :  { %2530 = vtanh.f32 %v3046_v7 }
 0x46d   :  { %2532 = vtanh.f32 %v471_v12 }
 0x46e   :  { %2534 = vtanh.f32 %v573_v13 }
 0x475   :  { %v2529_v8 = vpop.eup %2528 }
 0x476   :  { %492 = vrot.lane.b32.xlu1 %v2529_v8, %s2717_s4  ;;  %v2531_v11 = vpop.eup %2530 }
 0x477   :  { %594 = vrot.lane.b32.xlu0 %v2531_v11, %s2717_s4  ;;  %v2533_v14 = vpop.eup %2532 }
 0x478   :  { %v475_v54 = vmul.f32 0.5, %v2533_v14  ;;  %v2535_v17 = vpop.eup %2534 }
 0x479   :  { %v577_v4 = vmul.f32 0.5, %v2535_v17 }
 0x47a   :  { %v477_v18 = vadd.f32 0.5, %v475_v54 }
 0x47b   :  { %v579_v28 = vadd.f32 0.5, %v577_v4 }
 0x4e8   :  { %v493_v19 = vpop.permute.xlu1 %492 }
 0x4e9   :  { %v495_v20 = vmul.f32 %v493_v19, %v477_v18  ;;  %v595_v29 = vpop.permute.xlu0 %594 }
 0x4ea   :  { %v597_v34 = vmul.f32 %v595_v29, %v579_v28 }
 0x4eb   :  { %599 = vrot.lane.b32.xlu1 %v495_v20, %s2717_s4 }
 0x4ec   :  { %2031 = vmatmul.mubr.msk.f32.vlgmr.msra.gmra.mrb[4].mxu0 %vm284_vm1, %v597_v34 }
 0x4ed   :  { %2222 = vmatpush1.bf16.msra.mxu0 %v2815_v23  ;;  %971 = vmatprep.mubr.f32.mxu0 %v2716_v0 }
 0x4ee   :  { %2224 = vmatprep.subr.bf16.mxu0 %v2817_v24 }
 0x4f1   :  { %2226 = vmatpush1.bf16.msra.mxu0 %v2838_v30 }
 0x4f2   :  { %2228 = vmatprep.subr.bf16.mxu0 %v2841_v31 }
 0x4f5   :  { %2230 = vmatpush1.bf16.msra.mxu0 %v2861_v37 }
 0x4f6   :  { %2232 = vmatprep.subr.bf16.mxu0 %v2864_v38 }
 0x4f9   :  { %2234 = vmatpush1.bf16.msra.mxu0 %v2878_v42 }
 0x4fa   :  { %2236 = vmatprep.subr.bf16.mxu0 %v2940_v5 }
 0x55d   :  { %v600_v26 = vpop.permute.xlu1 %599 }
 0x55e   :  { %v602_v27 = vsel %vm284_vm1, %v597_v34, %v600_v26 }
 0x55f   :  { %668 = vmatmul.mubr.f32.vlgmr.msra.gmra.mrb[2].mxu1 %v602_v27 }
 0x560   :  { %2190 = vmatpush1.bf16.msra.mxu1 %v2942_v9  ;;  %871 = vmatprep.mubr.f32.mxu1 %v2716_v0 }
 0x561   :  { %2192 = vmatprep.subr.bf16.mxu1 %v2944_v10 }
 0x564   :  { %2194 = vmatpush1.bf16.msra.mxu1 %v2948_v15 }
 0x565   :  { %2196 = vmatprep.subr.bf16.mxu1 %v2951_v16 }
 0x568   :  { %2198 = vmatpush1.bf16.msra.mxu1 %v2954_v22 }
 0x569   :  { %2200 = vmatprep.subr.bf16.mxu1 %v2957_v25 }
 0x56c   :  { %2202 = vmatpush1.bf16.msra.mxu1 %v2960_v32 }
 0x56d   :  { %2204 = vmatprep.subr.bf16.mxu1 %v2963_v33 }
 0x570   :  { %2206 = vmatpush1.bf16.msra.mxu1 %v2966_v40 }
 0x571   :  { %2208 = vmatprep.subr.bf16.mxu1 %v2969_v41 }
 0x574   :  { %2210 = vmatpush1.bf16.msra.mxu1 %v2972_v47 }
 0x575   :  { %2212 = vmatprep.subr.bf16.mxu1 %v2975_v50 }
 0x578   :  { %2214 = vmatpush1.bf16.msra.mxu1 %v2978_v59 }
 0x579   :  { %2216 = vmatprep.subr.bf16.mxu1 %v2981_v60 }
 0x57c   :  { %2218 = vmatpush1.bf16.msra.mxu1 %v2984_v1 }
 0x57d   :  { %2284 = vmatprep.subr.bf16.mxu1 %v2940_v5 }
 0x5bf   :  { %v769_v35 = vpop.f32.mrb[4].mxu0 }
 0x5c0   :  { %v771_v36 = vpop.f32.mrb[5].mxu0  ;;  %v2475_v44 = vadd.f32 %v769_v35, %v2933_v57 }
 0x5c1   :  { %v2476_v39 = vadd.f32 %v771_v36, %v2923_v51 }
 0x5c2   :  { %v776_v45 = vmul.f32 0.5, %v2475_v44 }
 0x5c3   :  { %2536 = vtanh.f32 %v2476_v39  ;;  %v777_v19 = vmul.f32 0.5, %v2476_v39 }
 0x5c4   :  { %2538 = vtanh.f32 %v776_v45 }
 0x5cd   :  { %v2537_v43 = vpop.eup %2536 }
 0x5ce   :  { %787 = vrot.lane.b32.xlu1 %v2537_v43, %s2717_s4  ;;  %v2539_v55 = vpop.eup %2538 }
 0x5cf   :  { %v780_v48 = vmul.f32 0.5, %v2539_v55 }
 0x5d1   :  { %v782_v58 = vadd.f32 0.5, %v780_v48 }
 0x5d3   :  { %v785_v54 = vmul.f32 %v782_v58, %v3046_v7 }
 0x632   :  { %v669_v46 = vpop.f32.mrb[2].mxu1 }
 0x633   :  { %v671_v52 = vpop.f32.mrb[3].mxu1  ;;  %v670_v3 = vadd.f32 %v669_v46, %v3036_v49 }
 0x634   :  { %v672_v53 = vadd.f32 %v671_v52, %v3028_v62 }
 0x635   :  { %v674_v6 = vmul.f32 0.5, %v670_v3 }
 0x636   :  { %2540 = vtanh.f32 %v672_v53 }
 0x637   :  { %2542 = vtanh.f32 %v674_v6 }
 0x640   :  { %v2541_v56 = vpop.eup %2540  ;;  %v788_v61 = vpop.permute.xlu1 %787 }
 0x641   :  { %685 = vrot.lane.b32.xlu0 %v2541_v56, %s2717_s4  ;;  %v790_v63 = vmul.f32 %v788_v61, %v782_v58  ;;  %v2543_v8 = vpop.eup %2542 }
 0x642   :  { %v678_v11 = vmul.f32 0.5, %v2543_v8 }
 0x643   :  { %792 = vrot.lane.b32.xlu1 %v790_v63, %s2717_s4 }
 0x644   :  { %v680_v12 = vadd.f32 0.5, %v678_v11 }
 0x646   :  { %v683_v20 = vmul.f32 %v680_v12, %v3042_v2  ;;  %v675_v2 = vmul.f32 0.5, %v672_v53 }
 0x6b3   :  { %v686_v13 = vpop.permute.xlu0 %685 }
 0x6b4   :  { %v688_v14 = vmul.f32 %v686_v13, %v680_v12 }
 0x6b5   :  { %v793_v17 = vpop.permute.xlu1 %792 }
 0x6b6   :  { %690 = vrot.lane.b32.xlu0 %v688_v14, %s2717_s4  ;;  %v3089_v18 = vadd.f32 %v793_v17, %v785_v54 }
 0x6b8   :  { %2544 = vtanh.f32 %v3089_v18 }
 0x6b9   :  { %2546 = vtanh.f32 %v777_v19 }
 0x6c2   :  { %v2545_v4 = vpop.eup %2544 }
 0x6c3   :  { %798 = vrot.lane.b32.xlu1 %v2545_v4, %s2717_s4  ;;  %v2547_v34 = vpop.eup %2546 }
 0x6c4   :  { %v781_v26 = vmul.f32 0.5, %v2547_v34 }
 0x6c6   :  { %v783_v27 = vadd.f32 0.5, %v781_v26 }
 0x728   :  { %v691_v28 = vpop.permute.xlu0 %690 }
 0x729   :  { %v3094_v29 = vadd.f32 %v691_v28, %v683_v20 }
 0x72b   :  { %2548 = vtanh.f32 %v3094_v29 }
 0x72c   :  { %2550 = vtanh.f32 %v675_v2 }
 0x735   :  { %v2549_v7 = vpop.eup %2548  ;;  %v799_v35 = vpop.permute.xlu1 %798 }
 0x736   :  { %696 = vrot.lane.b32.xlu0 %v2549_v7, %s2717_s4  ;;  %v801_v36 = vmul.f32 %v799_v35, %v783_v27  ;;  %v2551_v39 = vpop.eup %2550 }
 0x737   :  { %v679_v43 = vmul.f32 0.5, %v2551_v39 }
 0x738   :  { %2032 = vmatmul.mubr.msk.f32.vlgmr.msra.gmra.mrb[6].mxu0 %vm284_vm1, %v801_v36 }
 0x739   :  { %2238 = vmatpush1.bf16.msra.mxu0 %v2942_v9  ;;  %1075 = vmatprep.mubr.f32.mxu0 %v2716_v0  ;;  %v681_v44 = vadd.f32 0.5, %v679_v43 }
 0x73a   :  { %2240 = vmatprep.subr.bf16.mxu0 %v2944_v10 }
 0x73d   :  { %2242 = vmatpush1.bf16.msra.mxu0 %v2948_v15 }
 0x73e   :  { %2244 = vmatprep.subr.bf16.mxu0 %v2951_v16 }
 0x741   :  { %2246 = vmatpush1.bf16.msra.mxu0 %v2954_v22 }
 0x742   :  { %2248 = vmatprep.subr.bf16.mxu0 %v2957_v25 }
 0x745   :  { %2250 = vmatpush1.bf16.msra.mxu0 %v2960_v32 }
 0x746   :  { %2252 = vmatprep.subr.bf16.mxu0 %v2963_v33 }
 0x749   :  { %2254 = vmatpush1.bf16.msra.mxu0 %v2966_v40 }
 0x74a   :  { %2256 = vmatprep.subr.bf16.mxu0 %v2969_v41 }
 0x74d   :  { %2258 = vmatpush1.bf16.msra.mxu0 %v2972_v47 }
 0x74e   :  { %2260 = vmatprep.subr.bf16.mxu0 %v2975_v50 }
 0x751   :  { %2262 = vmatpush1.bf16.msra.mxu0 %v2978_v59 }
 0x752   :  { %2264 = vmatprep.subr.bf16.mxu0 %v2981_v60 }
 0x755   :  { %2266 = vmatpush1.bf16.msra.mxu0 %v2984_v1 }
 0x756   :  { %2268 = vmatprep.subr.bf16.mxu0 %v2810_v21 }
 0x7a8   :  { %v697_v45 = vpop.permute.xlu0 %696 }
 0x7a9   :  { %v699_v46 = vmul.f32 %v697_v45, %v681_v44 }
 0x7ab   :  { %803 = vrot.lane.b32.xlu0 %v699_v46, %s2717_s4 }
 0x80b   :  { %v973_v52 = vpop.f32.mrb[6].mxu0 }
 0x80c   :  { %v975_v55 = vpop.f32.mrb[7].mxu0  ;;  %v2477_v61 = vadd.f32 %v973_v52, %v2933_v57 }
 0x80d   :  { %v3118_v48 = vadd.f32 %v975_v55, %v2923_v51 }
 0x80e   :  { %v980_v63 = vmul.f32 0.5, %v2477_v61 }
 0x80f   :  { %2552 = vtanh.f32 %v3118_v48 }
 0x810   :  { %2554 = vtanh.f32 %v980_v63 }
 0x819   :  { %v2553_v56 = vpop.eup %2552 }
 0x81a   :  { %991 = vrot.lane.b32.xlu0 %v2553_v56, %s2717_s4  ;;  %v2555_v3 = vpop.eup %2554 }
 0x81b   :  { %v984_v6 = vmul.f32 0.5, %v2555_v3 }
 0x81d   :  { %v804_v58 = vpop.permute.xlu0 %803  ;;  %v986_v8 = vadd.f32 0.5, %v984_v6 }
 0x81e   :  { %v806_v53 = vsel %vm284_vm1, %v801_v36, %v804_v58 }
 0x81f   :  { %872 = vmatmul.mubr.f32.vlgmr.msra.gmra.mrb[4].mxu1 %v806_v53  ;;  %v989_v4 = vmul.f32 %v986_v8, %v3089_v18  ;;  %v981_v53 = vmul.f32 0.5, %v3118_v48 }
 0x820   :  { %2286 = vmatpush1.bf16.msra.mxu1 %v2942_v9  ;;  %1279 = vmatprep.mubr.f32.mxu1 %v2716_v0 }
 0x821   :  { %2288 = vmatprep.subr.bf16.mxu1 %v2944_v10 }
 0x824   :  { %2290 = vmatpush1.bf16.msra.mxu1 %v2948_v15 }
 0x825   :  { %2292 = vmatprep.subr.bf16.mxu1 %v2951_v16 }
 0x828   :  { %2294 = vmatpush1.bf16.msra.mxu1 %v2954_v22 }
 0x829   :  { %2296 = vmatprep.subr.bf16.mxu1 %v2957_v25 }
 0x82c   :  { %2298 = vmatpush1.bf16.msra.mxu1 %v2960_v32 }
 0x82d   :  { %2300 = vmatprep.subr.bf16.mxu1 %v2963_v33 }
 0x830   :  { %2302 = vmatpush1.bf16.msra.mxu1 %v2966_v40 }
 0x831   :  { %2304 = vmatprep.subr.bf16.mxu1 %v2969_v41 }
 0x834   :  { %2306 = vmatpush1.bf16.msra.mxu1 %v2972_v47 }
 0x835   :  { %2308 = vmatprep.subr.bf16.mxu1 %v2975_v50 }
 0x838   :  { %2310 = vmatpush1.bf16.msra.mxu1 %v2978_v59 }
 0x839   :  { %2312 = vmatprep.subr.bf16.mxu1 %v2981_v60 }
 0x83c   :  { %2314 = vmatpush1.bf16.msra.mxu1 %v2984_v1 }
 0x83d   :  { %2332 = vmatprep.subr.bf16.mxu1 %v2940_v5 }
 0x88c   :  { %v992_v11 = vpop.permute.xlu0 %991 }
 0x88d   :  { %v994_v12 = vmul.f32 %v992_v11, %v986_v8 }
 0x88f   :  { %996 = vrot.lane.b32.xlu0 %v994_v12, %s2717_s4 }
 0x8f2   :  { %v873_v13 = vpop.f32.mrb[4].mxu1 }
 0x8f3   :  { %v875_v14 = vpop.f32.mrb[5].mxu1  ;;  %v874_v34 = vadd.f32 %v873_v13, %v3036_v49 }
 0x8f4   :  { %v876_v54 = vadd.f32 %v875_v14, %v3028_v62 }
 0x8f5   :  { %v878_v26 = vmul.f32 0.5, %v874_v34 }
 0x8f6   :  { %2556 = vtanh.f32 %v876_v54  ;;  %v879_v45 = vmul.f32 0.5, %v876_v54 }
 0x900   :  { %v2557_v17 = vpop.eup %2556 }
 0x901   :  { %889 = vrot.lane.b32.xlu1 %v2557_v17, %s2717_s4  ;;  %v997_v19 = vpop.permute.xlu0 %996 }
 0x902   :  { %v3145_v20 = vadd.f32 %v997_v19, %v989_v4 }
 0x904   :  { %2558 = vtanh.f32 %v3145_v20 }
 0x905   :  { %2560 = vtanh.f32 %v878_v26 }
 0x90e   :  { %v2559_v28 = vpop.eup %2558 }
 0x90f   :  { %1002 = vrot.lane.b32.xlu0 %v2559_v28, %s2717_s4  ;;  %v2561_v7 = vpop.eup %2560 }
 0x910   :  { %v882_v27 = vmul.f32 0.5, %v2561_v7 }
 0x912   :  { %v884_v35 = vadd.f32 0.5, %v882_v27 }
 0x914   :  { %v887_v18 = vmul.f32 %v884_v35, %v3094_v29 }
 0x973   :  { %v890_v36 = vpop.permute.xlu1 %889 }
 0x974   :  { %v892_v2 = vmul.f32 %v890_v36, %v884_v35 }
 0x976   :  { %894 = vrot.lane.b32.xlu1 %v892_v2, %s2717_s4 }
 0x981   :  { %v1003_v63 = vpop.permute.xlu0 %1002 }
 0x9e8   :  { %v895_v39 = vpop.permute.xlu1 %894 }
 0x9e9   :  { %v3152_v43 = vadd.f32 %v895_v39, %v887_v18 }
 0x9eb   :  { %2562 = vtanh.f32 %v3152_v43 }
 0x9ec   :  { %2564 = vtanh.f32 %v879_v45 }
 0x9ed   :  { %2566 = vtanh.f32 %v981_v53 }
 0x9f5   :  { %v2563_v44 = vpop.eup %2562 }
 0x9f6   :  { %900 = vrot.lane.b32.xlu1 %v2563_v44, %s2717_s4  ;;  %v2565_v46 = vpop.eup %2564 }
 0x9f7   :  { %v883_v52 = vmul.f32 0.5, %v2565_v46  ;;  %v2567_v29 = vpop.eup %2566 }
 0x9f8   :  { %v985_v61 = vmul.f32 0.5, %v2567_v29 }
 0x9f9   :  { %v885_v55 = vadd.f32 0.5, %v883_v52 }
 0x9fa   :  { %v987_v3 = vadd.f32 0.5, %v985_v61 }
 0x9fc   :  { %v1005_v6 = vmul.f32 %v1003_v63, %v987_v3 }
 0xa68   :  { %v901_v56 = vpop.permute.xlu1 %900 }
 0xa69   :  { %v903_v58 = vmul.f32 %v901_v56, %v885_v55 }
 0xa6b   :  { %1007 = vrot.lane.b32.xlu1 %v903_v58, %s2717_s4 }
 0xadd   :  { %v1008_v8 = vpop.permute.xlu1 %1007 }
 0xade   :  { %v1010_v11 = vsel %vm284_vm1, %v1005_v6, %v1008_v8 }
 0xadf   :  { %1076 = vmatmul.mubr.f32.vlgmr.msra.gmra.mrb[16].mxu0 %v1010_v11 }
 0xae0   :  { %2270 = vmatpush1.bf16.msra.mxu0 %v2815_v23  ;;  %1175 = vmatprep.mubr.f32.mxu0 %v2716_v0 }
 0xae1   :  { %2272 = vmatprep.subr.bf16.mxu0 %v2817_v24 }
 0xae4   :  { %2274 = vmatpush1.bf16.msra.mxu0 %v2838_v30 }
 0xae5   :  { %2276 = vmatprep.subr.bf16.mxu0 %v2841_v31 }
 0xae8   :  { %2278 = vmatpush1.bf16.msra.mxu0 %v2861_v37 }
 0xae9   :  { %2280 = vmatprep.subr.bf16.mxu0 %v2864_v38 }
 0xaec   :  { %2282 = vmatpush1.bf16.msra.mxu0 %v2878_v42 }
 0xaed   :  { %2316 = vmatprep.subr.bf16.mxu0 %v2810_v21 }
 0xaef   :  { %2033 = vmatmul.mubr.msk.f32.vlgmr.msra.gmra.mrb[8].mxu0 %vm284_vm1, %v1005_v6 }
 0xaf0   :  { %2318 = vmatpush1.bf16.msra.mxu0 %v2815_v23  ;;  %1379 = vmatprep.mubr.f32.mxu0 %v2716_v0 }
 0xaf1   :  { %2320 = vmatprep.subr.bf16.mxu0 %v2817_v24 }
 0xaf4   :  { %2322 = vmatpush1.bf16.msra.mxu0 %v2838_v30 }
 0xaf5   :  { %2324 = vmatprep.subr.bf16.mxu0 %v2841_v31 }
 0xaf8   :  { %2326 = vmatpush1.bf16.msra.mxu0 %v2861_v37 }
 0xaf9   :  { %2328 = vmatprep.subr.bf16.mxu0 %v2864_v38 }
 0xafc   :  { %2330 = vmatpush1.bf16.msra.mxu0 %v2878_v42 }
 0xafd   :  { %2364 = vmatprep.subr.bf16.mxu0 %v2810_v21 }
 0xbb2   :  { %v1077_v48 = vpop.f32.mrb[16].mxu0 }
 0xbb3   :  { %v1079_v12 = vpop.f32.mrb[17].mxu0  ;;  %v1078_v28 = vadd.f32 %v1077_v48, %v3036_v49 }
 0xbb4   :  { %v1080_v13 = vadd.f32 %v1079_v12, %v3028_v62 }
 0xbb5   :  { %v1082_v34 = vmul.f32 0.5, %v1078_v28 }
 0xbb6   :  { %2568 = vtanh.f32 %v1080_v13  ;;  %v1083_v6 = vmul.f32 0.5, %v1080_v13 }
 0xbc0   :  { %v2569_v14 = vpop.eup %2568 }
 0xbc1   :  { %1093 = vrot.lane.b32.xlu0 %v2569_v14, %s2717_s4 }
 0xbc2   :  { %v1177_v54 = vpop.f32.mrb[8].mxu0 }
 0xbc3   :  { %v1179_v17 = vpop.f32.mrb[9].mxu0  ;;  %v2479_v26 = vadd.f32 %v1177_v54, %v2933_v57 }
 0xbc4   :  { %v2480_v4 = vadd.f32 %v1179_v17, %v2923_v51 }
 0xbc5   :  { %v1184_v27 = vmul.f32 0.5, %v2479_v26 }
 0xbc6   :  { %2570 = vtanh.f32 %v2480_v4  ;;  %v1185_v8 = vmul.f32 0.5, %v2480_v4 }
 0xbc7   :  { %2572 = vtanh.f32 %v1082_v34 }
 0xbc8   :  { %2574 = vtanh.f32 %v1184_v27 }
 0xbd0   :  { %v2571_v19 = vpop.eup %2570 }
 0xbd1   :  { %1195 = vrot.lane.b32.xlu1 %v2571_v19, %s2717_s4  ;;  %v2573_v7 = vpop.eup %2572 }
 0xbd2   :  { %v1086_v35 = vmul.f32 0.5, %v2573_v7  ;;  %v2575_v39 = vpop.eup %2574 }
 0xbd3   :  { %v1188_v44 = vmul.f32 0.5, %v2575_v39 }
 0xbd4   :  { %v1088_v36 = vadd.f32 0.5, %v1086_v35 }
 0xbd5   :  { %v1190_v45 = vadd.f32 0.5, %v1188_v44 }
 0xbd6   :  { %v1091_v55 = vmul.f32 %v1088_v36, %v3152_v43 }
 0xbd7   :  { %v1193_v29 = vmul.f32 %v1190_v45, %v3145_v20 }
 0xc33   :  { %v1094_v2 = vpop.permute.xlu0 %1093 }
 0xc34   :  { %v1096_v18 = vmul.f32 %v1094_v2, %v1088_v36 }
 0xc36   :  { %1098 = vrot.lane.b32.xlu0 %v1096_v18, %s2717_s4 }
 0xc43   :  { %v1196_v46 = vpop.permute.xlu1 %1195 }
 0xc44   :  { %v1198_v52 = vmul.f32 %v1196_v46, %v1190_v45 }
 0xc46   :  { %1200 = vrot.lane.b32.xlu1 %v1198_v52, %s2717_s4 }
 0xca8   :  { %v1099_v56 = vpop.permute.xlu0 %1098 }
 0xca9   :  { %v3187_v58 = vadd.f32 %v1099_v56, %v1091_v55 }
 0xcab   :  { %2576 = vtanh.f32 %v3187_v58 }
 0xcb5   :  { %v2577_v53 = vpop.eup %2576 }
 0xcb6   :  { %1104 = vrot.lane.b32.xlu0 %v2577_v53, %s2717_s4 }
 0xcb8   :  { %v1201_v61 = vpop.permute.xlu1 %1200 }
 0xcb9   :  { %v3192_v63 = vadd.f32 %v1201_v61, %v1193_v29 }
 0xcbb   :  { %2578 = vtanh.f32 %v3192_v63 }
 0xcbc   :  { %2580 = vtanh.f32 %v1083_v6 }
 0xcbd   :  { %2582 = vtanh.f32 %v1185_v8 }
 0xcc5   :  { %v2579_v3 = vpop.eup %2578 }
 0xcc6   :  { %1206 = vrot.lane.b32.xlu1 %v2579_v3, %s2717_s4  ;;  %v2581_v43 = vpop.eup %2580 }
 0xcc7   :  { %v1087_v11 = vmul.f32 0.5, %v2581_v43  ;;  %v2583_v20 = vpop.eup %2582 }
 0xcc8   :  { %v1189_v54 = vmul.f32 0.5, %v2583_v20 }
 0xcc9   :  { %v1089_v48 = vadd.f32 0.5, %v1087_v11 }
 0xcca   :  { %v1191_v17 = vadd.f32 0.5, %v1189_v54 }
 0xd28   :  { %v1105_v12 = vpop.permute.xlu0 %1104 }
 0xd29   :  { %v1107_v14 = vmul.f32 %v1105_v12, %v1089_v48 }
 0xd2b   :  { %1211 = vrot.lane.b32.xlu0 %v1107_v14, %s2717_s4 }
 0xd38   :  { %v1207_v19 = vpop.permute.xlu1 %1206 }
 0xd39   :  { %v1209_v28 = vmul.f32 %v1207_v19, %v1191_v17 }
 0xd3b   :  { %2034 = vmatmul.mubr.msk.f32.vlgmr.msra.gmra.mrb[10].mxu0 %vm284_vm1, %v1209_v28 }
 0xd3c   :  { %2366 = vmatpush1.bf16.msra.mxu0 %v2815_v23  ;;  %1583 = vmatprep.mubr.f32.mxu0 %v2716_v0 }
 0xd3d   :  { %2368 = vmatprep.subr.bf16.mxu0 %v2817_v24 }
 0xd40   :  { %2370 = vmatpush1.bf16.msra.mxu0 %v2838_v30 }
 0xd41   :  { %2372 = vmatprep.subr.bf16.mxu0 %v2841_v31 }
 0xd44   :  { %2374 = vmatpush1.bf16.msra.mxu0 %v2861_v37 }
 0xd45   :  { %2376 = vmatprep.subr.bf16.mxu0 %v2864_v38 }
 0xd48   :  { %2378 = vmatpush1.bf16.msra.mxu0 %v2878_v42 }
 0xd49   :  { %2412 = vmatprep.subr.bf16.mxu0 %v2810_v21 }
 0xd9d   :  { %v1212_v13 = vpop.permute.xlu0 %1211 }
 0xd9e   :  { %v1214_v4 = vsel %vm284_vm1, %v1209_v28, %v1212_v13 }
 0xd9f   :  { %1280 = vmatmul.mubr.f32.vlgmr.msra.gmra.mrb[6].mxu1 %v1214_v4 }
 0xda0   :  { %2334 = vmatpush1.bf16.msra.mxu1 %v2942_v9  ;;  %1483 = vmatprep.mubr.f32.mxu1 %v2716_v0 }
 0xda1   :  { %2336 = vmatprep.subr.bf16.mxu1 %v2944_v10 }
 0xda4   :  { %2338 = vmatpush1.bf16.msra.mxu1 %v2948_v15 }
 0xda5   :  { %2340 = vmatprep.subr.bf16.mxu1 %v2951_v16 }
 0xda8   :  { %2342 = vmatpush1.bf16.msra.mxu1 %v2954_v22 }
 0xda9   :  { %2344 = vmatprep.subr.bf16.mxu1 %v2957_v25 }
 0xdac   :  { %2346 = vmatpush1.bf16.msra.mxu1 %v2960_v32 }
 0xdad   :  { %2348 = vmatprep.subr.bf16.mxu1 %v2963_v33 }
 0xdb0   :  { %2350 = vmatpush1.bf16.msra.mxu1 %v2966_v40 }
 0xdb1   :  { %2352 = vmatprep.subr.bf16.mxu1 %v2969_v41 }
 0xdb4   :  { %2354 = vmatpush1.bf16.msra.mxu1 %v2972_v47 }
 0xdb5   :  { %2356 = vmatprep.subr.bf16.mxu1 %v2975_v50 }
 0xdb8   :  { %2358 = vmatpush1.bf16.msra.mxu1 %v2978_v59 }
 0xdb9   :  { %2360 = vmatprep.subr.bf16.mxu1 %v2981_v60 }
 0xdbc   :  { %2362 = vmatpush1.bf16.msra.mxu1 %v2984_v1 }
 0xdbd   :  { %2380 = vmatprep.subr.bf16.mxu1 %v2940_v5 }
 0xe0e   :  { %v1381_v21 = vpop.f32.mrb[10].mxu0 }
 0xe0f   :  { %v1383_v34 = vpop.f32.mrb[11].mxu0  ;;  %v2481_v2 = vadd.f32 %v1381_v21, %v2933_v57 }
 0xe10   :  { %v2482_v26 = vadd.f32 %v1383_v34, %v2923_v51 }
 0xe11   :  { %v1388_v18 = vmul.f32 0.5, %v2481_v2 }
 0xe12   :  { %2584 = vtanh.f32 %v2482_v26  ;;  %v1389_v17 = vmul.f32 0.5, %v2482_v26 }
 0xe1c   :  { %v2585_v7 = vpop.eup %2584 }
 0xe1d   :  { %1399 = vrot.lane.b32.xlu0 %v2585_v7, %s2717_s4 }
 0xe72   :  { %v1281_v27 = vpop.f32.mrb[6].mxu1 }
 0xe73   :  { %v1283_v35 = vpop.f32.mrb[7].mxu1  ;;  %v1282_v56 = vadd.f32 %v1281_v27, %v3036_v49 }
 0xe74   :  { %v1284_v36 = vadd.f32 %v1283_v35, %v3028_v62 }
 0xe75   :  { %v1286_v53 = vmul.f32 0.5, %v1282_v56 }
 0xe76   :  { %2586 = vtanh.f32 %v1284_v36 }
 0xe77   :  { %2588 = vtanh.f32 %v1388_v18 }
 0xe78   :  { %2590 = vtanh.f32 %v1286_v53 }
 0xe80   :  { %v2587_v39 = vpop.eup %2586 }
 0xe81   :  { %1297 = vrot.lane.b32.xlu1 %v2587_v39, %s2717_s4  ;;  %v2589_v44 = vpop.eup %2588 }
 0xe82   :  { %v1392_v45 = vmul.f32 0.5, %v2589_v44  ;;  %v2591_v29 = vpop.eup %2590 }
 0xe83   :  { %v1290_v61 = vmul.f32 0.5, %v2591_v29 }
 0xe84   :  { %v1394_v46 = vadd.f32 0.5, %v1392_v45 }
 0xe85   :  { %v1292_v3 = vadd.f32 0.5, %v1290_v61 }
 0xe86   :  { %v1397_v8 = vmul.f32 %v1394_v46, %v3192_v63 }
 0xe87   :  { %v1295_v14 = vmul.f32 %v1292_v3, %v3187_v58  ;;  %v1287_v58 = vmul.f32 0.5, %v1284_v36 }
 0xe8f   :  { %v1400_v52 = vpop.permute.xlu0 %1399 }
 0xe90   :  { %v1402_v55 = vmul.f32 %v1400_v52, %v1394_v46 }
 0xe92   :  { %1404 = vrot.lane.b32.xlu0 %v1402_v55, %s2717_s4 }
 0xef3   :  { %v1298_v6 = vpop.permute.xlu1 %1297 }
 0xef4   :  { %v1300_v43 = vmul.f32 %v1298_v6, %v1292_v3 }
 0xef6   :  { %1302 = vrot.lane.b32.xlu1 %v1300_v43, %s2717_s4 }
 0xf04   :  { %v1405_v11 = vpop.permute.xlu0 %1404 }
 0xf05   :  { %v3234_v48 = vadd.f32 %v1405_v11, %v1397_v8 }
 0xf07   :  { %2592 = vtanh.f32 %v3234_v48 }
 0xf11   :  { %v2593_v12 = vpop.eup %2592 }
 0xf12   :  { %1410 = vrot.lane.b32.xlu0 %v2593_v12, %s2717_s4 }
 0xf68   :  { %v1303_v20 = vpop.permute.xlu1 %1302 }
 0xf69   :  { %v3239_v54 = vadd.f32 %v1303_v20, %v1295_v14 }
 0xf6b   :  { %2594 = vtanh.f32 %v3239_v54 }
 0xf6c   :  { %2596 = vtanh.f32 %v1389_v17 }
 0xf6d   :  { %2598 = vtanh.f32 %v1287_v58 }
 0xf75   :  { %v2595_v19 = vpop.eup %2594 }
 0xf76   :  { %1308 = vrot.lane.b32.xlu1 %v2595_v19, %s2717_s4  ;;  %v2597_v63 = vpop.eup %2596 }
 0xf77   :  { %v1393_v28 = vmul.f32 0.5, %v2597_v63  ;;  %v2599_v34 = vpop.eup %2598 }
 0xf79   :  { %v1395_v13 = vadd.f32 0.5, %v1393_v28 }
 0xf84   :  { %v1411_v4 = vpop.permute.xlu0 %1410 }
 0xf85   :  { %v1413_v21 = vmul.f32 %v1411_v4, %v1395_v13 }
 0xf87   :  { %2035 = vmatmul.mubr.msk.f32.vlgmr.msra.gmra.mrb[12].mxu0 %vm284_vm1, %v1413_v21 }
 0xf88   :  { %2414 = vmatpush1.bf16.msra.mxu0 %v2815_v23  ;;  %1787 = vmatprep.mubr.f32.mxu0 %v2716_v0  ;;  %v1291_v23 = vmul.f32 0.5, %v2599_v34 }
 0xf89   :  { %2416 = vmatprep.subr.bf16.mxu0 %v2817_v24 }
 0xf8a   :  { %v1293_v26 = vadd.f32 0.5, %v1291_v23 }
 0xf8c   :  { %2418 = vmatpush1.bf16.msra.mxu0 %v2838_v30 }
 0xf8d   :  { %2420 = vmatprep.subr.bf16.mxu0 %v2841_v31 }
 0xf90   :  { %2422 = vmatpush1.bf16.msra.mxu0 %v2861_v37 }
 0xf91   :  { %2424 = vmatprep.subr.bf16.mxu0 %v2864_v38 }
 0xf94   :  { %2426 = vmatpush1.bf16.msra.mxu0 %v2878_v42 }
 0xf95   :  { %2428 = vmatprep.subr.bf16.mxu0 %v2940_v5 }
 0xfe8   :  { %v1309_v7 = vpop.permute.xlu1 %1308 }
 0xfe9   :  { %v1311_v27 = vmul.f32 %v1309_v7, %v1293_v26 }
 0xfeb   :  { %1415 = vrot.lane.b32.xlu1 %v1311_v27, %s2717_s4 }
0x105a   :  { %v1585_v24 = vpop.f32.mrb[12].mxu0 }
0x105b   :  { %v1587_v30 = vpop.f32.mrb[13].mxu0  ;;  %v2483_v5 = vadd.f32 %v1585_v24, %v2933_v57 }
0x105c   :  { %v2484_v31 = vadd.f32 %v1587_v30, %v2923_v51 }
0x105d   :  { %v1416_v37 = vpop.permute.xlu1 %1415  ;;  %v1592_v35 = vmul.f32 0.5, %v2483_v5 }
0x105e   :  { %2600 = vtanh.f32 %v2484_v31  ;;  %v1418_v38 = vsel %vm284_vm1, %v1413_v21, %v1416_v37 }
0x105f   :  { %1484 = vmatmul.mubr.f32.vlgmr.msra.gmra.mrb[8].mxu1 %v1418_v38  ;;  %2602 = vtanh.f32 %v1592_v35 }
0x1060   :  { %2382 = vmatpush1.bf16.msra.mxu1 %v2942_v9  ;;  %1687 = vmatprep.mubr.f32.mxu1 %v2716_v0 }
0x1061   :  { %2384 = vmatprep.subr.bf16.mxu1 %v2944_v10 }
0x1064   :  { %2386 = vmatpush1.bf16.msra.mxu1 %v2948_v15 }
0x1065   :  { %2388 = vmatprep.subr.bf16.mxu1 %v2951_v16 }
0x1068   :  { %v2601_v42 = vpop.eup %2600  ;;  %2390 = vmatpush1.bf16.msra.mxu1 %v2954_v22 }
0x1069   :  { %1603 = vrot.lane.b32.xlu1 %v2601_v42, %s2717_s4  ;;  %2392 = vmatprep.subr.bf16.mxu1 %v2957_v25  ;;  %v2603_v36 = vpop.eup %2602 }
0x106a   :  { %v1596_v2 = vmul.f32 0.5, %v2603_v36 }
0x106c   :  { %2394 = vmatpush1.bf16.msra.mxu1 %v2960_v32  ;;  %v1598_v18 = vadd.f32 0.5, %v1596_v2 }
0x106d   :  { %2396 = vmatprep.subr.bf16.mxu1 %v2963_v33 }
0x106e   :  { %v1601_v56 = vmul.f32 %v1598_v18, %v3234_v48  ;;  %v1593_v48 = vmul.f32 0.5, %v2484_v31 }
0x1070   :  { %2398 = vmatpush1.bf16.msra.mxu1 %v2966_v40 }
0x1071   :  { %2400 = vmatprep.subr.bf16.mxu1 %v2969_v41 }
0x1074   :  { %2402 = vmatpush1.bf16.msra.mxu1 %v2972_v47 }
0x1075   :  { %2404 = vmatprep.subr.bf16.mxu1 %v2975_v50 }
0x1078   :  { %2406 = vmatpush1.bf16.msra.mxu1 %v2978_v59 }
0x1079   :  { %2408 = vmatprep.subr.bf16.mxu1 %v2981_v60 }
0x107c   :  { %2410 = vmatpush1.bf16.msra.mxu1 %v2984_v1 }
0x10db   :  { %v1604_v39 = vpop.permute.xlu1 %1603 }
0x10dc   :  { %v1606_v44 = vmul.f32 %v1604_v39, %v1598_v18 }
0x10de   :  { %1608 = vrot.lane.b32.xlu1 %v1606_v44, %s2717_s4 }
0x1132   :  { %v1485_v45 = vpop.f32.mrb[8].mxu1 }
0x1133   :  { %v1487_v46 = vpop.f32.mrb[9].mxu1  ;;  %v1486_v3 = vadd.f32 %v1485_v45, %v3036_v49 }
0x1134   :  { %v1488_v52 = vadd.f32 %v1487_v46, %v3028_v62 }
0x1135   :  { %v1490_v6 = vmul.f32 0.5, %v1486_v3 }
0x1136   :  { %2604 = vtanh.f32 %v1488_v52 }
0x1140   :  { %v2605_v55 = vpop.eup %2604 }
0x1141   :  { %1501 = vrot.lane.b32.xlu0 %v2605_v55, %s2717_s4 }
0x1150   :  { %v1609_v53 = vpop.permute.xlu1 %1608 }
0x1151   :  { %v3278_v29 = vadd.f32 %v1609_v53, %v1601_v56 }
0x1153   :  { %2606 = vtanh.f32 %v3278_v29 }
0x1154   :  { %2608 = vtanh.f32 %v1490_v6 }
0x1155   :  { %2610 = vtanh.f32 %v1593_v48 }
0x115d   :  { %v2607_v61 = vpop.eup %2606 }
0x115e   :  { %1614 = vrot.lane.b32.xlu1 %v2607_v61, %s2717_s4  ;;  %v2609_v43 = vpop.eup %2608 }
0x115f   :  { %v1494_v8 = vmul.f32 0.5, %v2609_v43  ;;  %v2611_v20 = vpop.eup %2610 }
0x1160   :  { %v1597_v17 = vmul.f32 0.5, %v2611_v20 }
0x1161   :  { %v1496_v11 = vadd.f32 0.5, %v1494_v8 }
0x1162   :  { %v1599_v19 = vadd.f32 0.5, %v1597_v17 }
0x11b3   :  { %v1502_v12 = vpop.permute.xlu0 %1501 }
0x11b4   :  { %v1504_v14 = vmul.f32 %v1502_v12, %v1496_v11 }
0x11b6   :  { %1506 = vrot.lane.b32.xlu0 %v1504_v14, %s2717_s4 }
0x11d0   :  { %v1615_v63 = vpop.permute.xlu1 %1614 }
0x11d1   :  { %v1617_v28 = vmul.f32 %v1615_v63, %v1599_v19 }
0x11d3   :  { %2036 = vmatmul.mubr.msk.f32.vlgmr.msra.gmra.mrb[14].mxu0 %vm284_vm1, %v1617_v28 }
0x11d4   :  { %2430 = vmatpush1.bf16.msra.mxu0 %v2942_v9  ;;  %1891 = vmatprep.mubr.f32.mxu0 %v2716_v0  ;;  %v1499_v9 = vmul.f32 %v1496_v11, %v3239_v54 }
0x11d5   :  { %2432 = vmatprep.subr.bf16.mxu0 %v2944_v10 }
0x11d8   :  { %2434 = vmatpush1.bf16.msra.mxu0 %v2948_v15 }
0x11d9   :  { %2436 = vmatprep.subr.bf16.mxu0 %v2951_v16 }
0x11dc   :  { %2438 = vmatpush1.bf16.msra.mxu0 %v2954_v22  ;;  %v1491_v22 = vmul.f32 0.5, %v1488_v52 }
0x11dd   :  { %2440 = vmatprep.subr.bf16.mxu0 %v2957_v25 }
0x11e0   :  { %2442 = vmatpush1.bf16.msra.mxu0 %v2960_v32 }
0x11e1   :  { %2444 = vmatprep.subr.bf16.mxu0 %v2963_v33 }
0x11e4   :  { %2446 = vmatpush1.bf16.msra.mxu0 %v2966_v40 }
0x11e5   :  { %2448 = vmatprep.subr.bf16.mxu0 %v2969_v41 }
0x11e8   :  { %2450 = vmatpush1.bf16.msra.mxu0 %v2972_v47 }
0x11e9   :  { %2452 = vmatprep.subr.bf16.mxu0 %v2975_v50 }
0x11ec   :  { %2454 = vmatpush1.bf16.msra.mxu0 %v2978_v59 }
0x11ed   :  { %2456 = vmatprep.subr.bf16.mxu0 %v2981_v60 }
0x11f0   :  { %2458 = vmatpush1.bf16.msra.mxu0 %v2984_v1 }
0x1228   :  { %v1507_v10 = vpop.permute.xlu0 %1506 }
0x1229   :  { %v1509_v15 = vadd.f32 %v1507_v10, %v1499_v9 }
0x122b   :  { %2612 = vtanh.f32 %v1509_v15 }
0x122c   :  { %2614 = vtanh.f32 %v1491_v22 }
0x1235   :  { %v2613_v16 = vpop.eup %2612 }
0x1236   :  { %1512 = vrot.lane.b32.xlu0 %v2613_v16, %s2717_s4  ;;  %v2615_v25 = vpop.eup %2614 }
0x1237   :  { %v1495_v32 = vmul.f32 0.5, %v2615_v25 }
0x1239   :  { %v1497_v41 = vadd.f32 0.5, %v1495_v32  ;;  %v118_v32 = vld [vmem:[%s3370_s6] sm:$0xff] }
0x12a6   :  { %v1789_v33 = vpop.f32.mrb[14].mxu0 }
0x12a7   :  { %v1791_v40 = vpop.f32.mrb[15].mxu0  ;;  %v2485_v1 = vadd.f32 %v1789_v33, %v2933_v57  ;;  %v2718_v33 = vmov 0.0|0.0  }
0x12a8   :  { %v2486_v47 = vadd.f32 %v1791_v40, %v2923_v51  ;;  %v1513_v50 = vpop.permute.xlu0 %1512  ;;  %2459 = vmatprep.subr.bf16.mxu1 %v2718_v33 }
0x12a9   :  { %v1515_v59 = vmul.f32 %v1513_v50, %v1497_v41  ;;  %v1796_v54 = vmul.f32 0.5, %v2485_v1  ;;  %v121_v41 = vld [vmem:[%s3370_s6 + $0x18] sm:$0xff]  ;;  %v122_v50 = vld [vmem:[%s3370_s6 + $0x20] sm:$0xff]  ;;  %v124_v1 = vld [vmem:[%s3370_s6 + $0x30] sm:$0xff] }
0x12aa   :  { %2616 = vtanh.f32 %v2486_v47  ;;  %v1797_v3 = vmul.f32 0.5, %v2486_v47 }
0x12ab   :  { %1619 = vrot.lane.b32.xlu0 %v1515_v59, %s2717_s4  ;;  %2618 = vtanh.f32 %v1796_v54  ;;  %v123_v59 = vld [vmem:[%s3370_s6 + $0x28] sm:$0xff]  ;;  %v125_v54 = vld [vmem:[%s3370_s6 + $0x38] sm:$0xff] }
0x12b4   :  { %v2617_v60 = vpop.eup %2616 }
0x12b5   :  { %1807 = vrot.lane.b32.xlu0 %v2617_v60, %s2717_s4  ;;  %v2619_v21 = vpop.eup %2618  ;;  %v2466_v60 = vpack.c.bf16 %v123_v59, %v122_v50 }
0x12b6   :  { %v1800_v58 = vmul.f32 0.5, %v2619_v21 }
0x12b8   :  { %v1802_v34 = vadd.f32 0.5, %v1800_v58 }
0x12ba   :  { %v1805_v26 = vmul.f32 %v1802_v34, %v3278_v29 }
0x131d   :  { %v1620_v13 = vpop.permute.xlu0 %1619 }
0x131e   :  { %v1622_v4 = vsel %vm284_vm1, %v1617_v28, %v1620_v13  ;;  %v2469_v13 = vpack.c.bf16 %v125_v54, %v124_v1 }
0x131f   :  { %1688 = vmatmul.mubr.f32.vlgmr.msra.gmra.mrb[10].mxu1 %v1622_v4 }
0x1320   :  { %2064 = vmatprep.mubr.msk.f32.mxu1 %vm2719_vm2, %v2716_v0 }
0x1327   :  { %v1808_v51 = vpop.permute.xlu0 %1807 }
0x1328   :  { %v1810_v23 = vmul.f32 %v1808_v51, %v1802_v34 }
0x132a   :  { %1812 = vrot.lane.b32.xlu0 %v1810_v23, %s2717_s4 }
0x139c   :  { %v1813_v7 = vpop.permute.xlu0 %1812 }
0x139d   :  { %v1815_v27 = vadd.f32 %v1813_v7, %v1805_v26 }
0x139f   :  { %2620 = vtanh.f32 %v1815_v27 }
0x13a9   :  { %v2621_v24 = vpop.eup %2620 }
0x13aa   :  { %1818 = vrot.lane.b32.xlu0 %v2621_v24, %s2717_s4 }
0x13f2   :  { %v1689_v57 = vpop.f32.mrb[10].mxu1 }
0x13f3   :  { %v1691_v30 = vpop.f32.mrb[11].mxu1  ;;  %v1690_v38 = vadd.f32 %v1689_v57, %v3036_v49  ;;  %v2037_v57 = vld [vmem:[%s3371_s7] ss:$0 sm:$0xff] }
0x13f4   :  { %v1692_v31 = vadd.f32 %v1691_v30, %v3028_v62 }
0x13f5   :  { %v1694_v42 = vmul.f32 0.5, %v1690_v38 }
0x13f6   :  { %2622 = vtanh.f32 %v1692_v31  ;;  %v1695_v52 = vmul.f32 0.5, %v1692_v31 }
0x13f7   :  { %2624 = vtanh.f32 %v1694_v42 }
0x1400   :  { %v2623_v37 = vpop.eup %2622 }
0x1401   :  { %1705 = vrot.lane.b32.xlu1 %v2623_v37, %s2717_s4  ;;  %v2625_v5 = vpop.eup %2624 }
0x1402   :  { %v1698_v35 = vmul.f32 0.5, %v2625_v5 }
0x1404   :  { %v1700_v36 = vadd.f32 0.5, %v1698_v35 }
0x1406   :  { %v1703_v39 = vmul.f32 %v1700_v36, %v1509_v15 }
0x141c   :  { %v1819_v8 = vpop.permute.xlu0 %1818 }
0x1473   :  { %v1706_v2 = vpop.permute.xlu1 %1705 }
0x1474   :  { %v1708_v18 = vmul.f32 %v1706_v2, %v1700_v36 }
0x1476   :  { %1710 = vrot.lane.b32.xlu1 %v1708_v18, %s2717_s4 }
0x14e8   :  { %v1711_v44 = vpop.permute.xlu1 %1710 }
0x14e9   :  { %v1713_v45 = vadd.f32 %v1711_v44, %v1703_v39 }
0x14eb   :  { %2626 = vtanh.f32 %v1713_v45 }
0x14ec   :  { %2628 = vtanh.f32 %v1695_v52 }
0x14ed   :  { %2630 = vtanh.f32 %v1797_v3 }
0x14f5   :  { %v2627_v46 = vpop.eup %2626 }
0x14f6   :  { %1716 = vrot.lane.b32.xlu1 %v2627_v46, %s2717_s4  ;;  %v2629_v55 = vpop.eup %2628 }
0x14f7   :  { %v1699_v56 = vmul.f32 0.5, %v2629_v55  ;;  %v2631_v6 = vpop.eup %2630 }
0x14f8   :  { %v1801_v43 = vmul.f32 0.5, %v2631_v6 }
0x14f9   :  { %v1701_v53 = vadd.f32 0.5, %v1699_v56 }
0x14fa   :  { %v1803_v11 = vadd.f32 0.5, %v1801_v43 }
0x14fc   :  { %v1821_v12 = vmul.f32 %v1819_v8, %v1803_v11 }
0x1568   :  { %v1717_v29 = vpop.permute.xlu1 %1716 }
0x1569   :  { %v1719_v61 = vmul.f32 %v1717_v29, %v1701_v53 }
0x156b   :  { %1823 = vrot.lane.b32.xlu1 %v1719_v61, %s2717_s4 }
0x15dd   :  { %v1824_v14 = vpop.permute.xlu1 %1823 }
0x15de   :  { %v1826_v48 = vsel %vm284_vm1, %v1821_v12, %v1824_v14 }
0x15df   :  { %1892 = vmatmul.mubr.f32.vlgmr.msra.gmra.mrb[18].mxu0 %v1826_v48 }
0x16b2   :  { %v1893_v20 = vpop.f32.mrb[18].mxu0 }
0x16b3   :  { %v1895_v17 = vpop.f32.mrb[19].mxu0  ;;  %v1894_v28 = vadd.f32 %v1893_v20, %v3036_v49  ;;  %v120_v49 = vld [vmem:[%s3370_s6 + $0x10] sm:$0xff] }
0x16b4   :  { %v1896_v19 = vadd.f32 %v1895_v17, %v3028_v62  ;;  %v119_v62 = vld [vmem:[%s3370_s6 + $0x8] sm:$0xff]  ;;  %v2463_v47 = vpack.c.bf16 %v121_v41, %v120_v49 }
0x16b5   :  { %v1898_v9 = vmul.f32 0.5, %v1894_v28  ;;  %v2460_v40 = vpack.c.bf16 %v119_v62, %v118_v32 }
0x16b6   :  { %2632 = vtanh.f32 %v1896_v19  ;;  %v1899_v51 = vmul.f32 0.5, %v1896_v19 }
0x16b7   :  { %2634 = vtanh.f32 %v1898_v9  ;;  %2461 = vmatpush3.bf16.msra.mxu1 %v2460_v40 }
0x16b8   :  { %2462 = vmatprep.subr.bf16.mxu1 %v2718_v33 }
0x16bb   :  { %2464 = vmatpush3.bf16.msra.mxu1 %v2463_v47 }
0x16bc   :  { %2465 = vmatprep.subr.bf16.mxu1 %v2718_v33 }
0x16bf   :  { %2467 = vmatpush3.bf16.msra.mxu1 %v2466_v60 }
0x16c0   :  { %v2633_v63 = vpop.eup %2632  ;;  %2468 = vmatprep.subr.bf16.mxu1 %v2718_v33 }
0x16c1   :  { %1909 = vrot.lane.b32.xlu0 %v2633_v63, %s2717_s4  ;;  %v2635_v10 = vpop.eup %2634 }
0x16c2   :  { %v1902_v15 = vmul.f32 0.5, %v2635_v10 }
0x16c3   :  { %2470 = vmatpush3.bf16.msra.mxu1 %v2469_v13 }
0x16c4   :  { %v1904_v16 = vadd.f32 0.5, %v1902_v15 }
0x16c6   :  { %v1907_v4 = vmul.f32 %v1904_v16, %v1713_v45 }
0x1733   :  { %v1910_v22 = vpop.permute.xlu0 %1909 }
0x1734   :  { %v1912_v25 = vmul.f32 %v1910_v22, %v1904_v16 }
0x1736   :  { %1914 = vrot.lane.b32.xlu1 %v1912_v25, %s2717_s4 }
0x17a8   :  { %v1915_v21 = vpop.permute.xlu1 %1914 }
0x17a9   :  { %v1917_v58 = vadd.f32 %v1915_v21, %v1907_v4 }
0x17ab   :  { %2636 = vtanh.f32 %v1917_v58 }
0x17ac   :  { %2638 = vtanh.f32 %v1899_v51 }
0x17b5   :  { %v2637_v34 = vpop.eup %2636 }
0x17b6   :  { %1920 = vrot.lane.b32.xlu0 %v2637_v34, %s2717_s4  ;;  %v2639_v23 = vpop.eup %2638 }
0x17b7   :  { %v1903_v26 = vmul.f32 0.5, %v2639_v23 }
0x17b9   :  { %v1905_v7 = vadd.f32 0.5, %v1903_v26 }
0x1828   :  { %v1921_v27 = vpop.permute.xlu0 %1920 }
0x1829   :  { %v1923_v24 = vmul.f32 %v1921_v27, %v1905_v7 }
0x182b   :  { %2065 = vmatmul.mubr.msk.f32.vlgmr.msra.gmra.mrb[12].mxu1 %vm284_vm1, %v1923_v24 }
0x18fe   :  { %v1999_v0 = vpop.f32.mrb[12].mxu1 }
0x18ff   :  { %v2000_v30 = vadd.f32 %v2037_v57, %v1999_v0  ;;  %v2066_v31 = vpop.f32.mrb[13].mxu1 }
0x1901   :  { %2004 = vst.msk [vmem:[#allocation7] sm:$0xff] %vm2003_vm3, %v2000_v30 }
0x1902   :  { %2695 = shalt.err (!%p2692_p6)
}
0x1903   :  { %s2696_s1 = scalar_lea.hbm %s3372_s8, 128 }
0x1904   :  { %p2697_p7 = scmp.ne.s32.totalorder %s3372_s8, %s2696_s1  ;;  %p2700_p8 = scmp.lt.u32.totalorder %s2696_s1, %s3372_s8 }
0x1906   :  { %p2702_p9 = pnand %p2700_p8, %p2697_p7 }
0x1908   :  { %2705 = shalt.err (!%p2702_p9)
}
0x1909   :  { %2014 = dma.vmem_to_hbm [thread:$0]  %s2012_s25, 128, %s3372_s8, [#allocation4]  }
0x190a   :  { %2710 = dma.done.wait [#allocation4], 128  }
0x190b   :  { %2711 = vsyncadd [#allocation4], 4294967168 }
0x190c   :  { %2018 = vsyncpa [#allocation3], 1 }
0x190d   :  { %2019 = vsyncpa [#allocation6], 1 }
0x190e   :  { %2020 = vsyncpa [#allocation4], 1 }

</bundles_post_ra>
